<compile_context>
chip_gen: v7x
topology: tpu7x:2x2x1
jax: 0.10.0
libtpu: 0.0.40
codegen_flags: <defaults>
</compile_context>

<pallas_src>
import functools

import jax
import jax.numpy as jnp
from jax.experimental import pallas as pl
from jax.experimental.pallas import tpu as pltpu


@functools.lru_cache(maxsize=None)
def _tensorcores_per_device() -> int:
    """Best-effort: TensorCores one kernel launch can shard over.

    Returns 1 on detection failure, which is both correct everywhere and the
    recommended (single-step) grid on v5e/v6e.
    """
    try:
        kind = jax.devices()[0].device_kind.lower()
    except Exception:
        return 1
    if "v7" in kind or "7x" in kind:   # v7x: 2 TensorCores per chip
        return 2
    return 1


def se_gate_conv1x1_kernel(gate_ref, w_ref, x_ref, o_ref):
    # gate_ref: (1, Cin)    f32        -- pre-sigmoid channel gate
    # w_ref:    (Cb, Cin)   bf16/f32   -- 1x1 conv weight block (OIHW squeezed)
    # x_ref:    (Cin, HW)   f32/bf16   -- NCHW activation, spatial flattened (lane dim)
    # o_ref:    (Cb, HW)    f32
    g = jax.nn.sigmoid(gate_ref[...])                      # (1, Cin) f32, EUP
    # Fold the gate into the weight columns (contraction axis) in f32; the
    # upcast keeps all VPU arithmetic in f32 (v5e has no bf16 VALU).
    wg = w_ref[...].astype(jnp.float32) * g                # (Cb, Cin) f32
    x = x_ref[...].astype(jnp.float32)                     # no-op when already f32
    # Kernel is DMA-bound, so the dot stays in f32 (no in-kernel bf16 casts).
    o_ref[...] = jnp.dot(wg, x, preferred_element_type=jnp.float32)


def se_gate_conv1x1(x329, x325, weight):
    """x329: (1, Cin, 1, 1), x325: (1, Cin, H, W), weight: (Cout, Cin, 1, 1).

    Returns (1, Cout, H, W) == Conv2d(Cin, Cout, 1, bias=False)(sigmoid(x329) * x325).
    `weight` may be pre-cast to bf16 at parameter-load time; `x325` may be bf16
    if its producer emits bf16.  Gate fold and accumulation are always f32.
    """
    N, Cin, H, W = x325.shape
    Cout = weight.shape[0]
    assert x329.shape == (N, Cin, 1, 1)
    assert weight.shape == (Cout, Cin, 1, 1)
    assert N == 1  # module is written for batch 1
    HW = H * W

    # Pure reshapes (contiguous views) -- no transposes.
    x = x325.reshape(Cin, HW)                  # (Cin, HW)
    gate = x329.reshape(1, Cin).astype(jnp.float32)
    w = weight.reshape(Cout, Cin)              # (Cout, Cin), bf16 or f32

    # Split output channels only when two TensorCores are actually available
    # (v7x); on 1-TC chips an extra grid step is pure overhead (~0.35 us/step).
    n_cores = _tensorcores_per_device()
    n_blocks = 2 if (n_cores >= 2 and Cout % 16 == 0) else 1
    cb = Cout // n_blocks

    if n_blocks > 1:
        # Plain "parallel" does not guarantee a per-core split; CORE_PARALLEL does.
        dim_sem = (pltpu.CORE_PARALLEL,)
    else:
        dim_sem = ("arbitrary",)

    out = pl.pallas_call(
        se_gate_conv1x1_kernel,
        out_shape=jax.ShapeDtypeStruct((Cout, HW), jnp.float32),
        grid=(n_blocks,),
        in_specs=[
            pl.BlockSpec((1, Cin), lambda i: (0, 0)),      # gate: grid-invariant
            pl.BlockSpec((cb, Cin), lambda i: (i, 0)),     # weight: per-block rows
            pl.BlockSpec((Cin, HW), lambda i: (0, 0)),     # activation: grid-invariant
        ],
        out_specs=pl.BlockSpec((cb, HW), lambda i: (i, 0)),
        compiler_params=pltpu.CompilerParams(dimension_semantics=dim_sem),
        cost_estimate=pl.CostEstimate(
            flops=2 * Cout * Cin * HW,
            transcendentals=Cin * n_blocks,
            bytes_accessed=(x.size * x.dtype.itemsize
                            + w.size * w.dtype.itemsize
                            + gate.size * gate.dtype.itemsize
                            + Cout * HW * 4),
        ),
    )(gate, w, x)

    return out.reshape(N, Cout, H, W)


if __name__ == "__main__":
    key = jax.random.PRNGKey(0)
    k1, k2, k3 = jax.random.split(key, 3)

    N, Cin, H, W, Cout = 1, 960, 14, 14, 160

    x325 = jax.random.normal(k1, (N, Cin, H, W), dtype=jnp.float32)
    x329 = jax.random.normal(k2, (N, Cin, 1, 1), dtype=jnp.float32)
    # deterministic synthetic conv weight (Conv2d(960, 160, 1, bias=False))
    weight_f32 = jax.random.normal(k3, (Cout, Cin, 1, 1), dtype=jnp.float32) * 0.02
    # One-time, parameter-load-time cast: ship the weight to the kernel in bf16
    # (halves its per-call HBM traffic; happens outside the jitted forward).
    weight = weight_f32.astype(jnp.bfloat16)

    fn = jax.jit(se_gate_conv1x1)
    out = jax.block_until_ready(fn(x329, x325, weight))
    assert out.shape == (N, Cout, H, W)

    # Pure-JAX reference using the same (bf16-stored) parameter, computed in f32.
    gated = jax.nn.sigmoid(x329) * x325
    ref = jax.lax.conv_general_dilated(
        gated, weight.astype(jnp.float32), window_strides=(1, 1), padding="VALID",
        dimension_numbers=("NCHW", "OIHW", "NCHW"),
    )
    max_err = float(jnp.max(jnp.abs(out - ref)))
    # MXU default f32-matmul precision on TPU may use bf16 passes; keep the
    # bf16-appropriate tolerance of the original check.
    assert jnp.allclose(out, ref, atol=2e-2, rtol=2e-2), max_err

    print("KERNEL_OK")
</pallas_src>

<mosaic_0001>
module attributes {stable_mosaic.version = 11 : i64} {
  func.func @se_gate_conv1x1_kernel(%arg0: i32, %arg1: memref<1x960xf32, #tpu.memory_space<vmem>>, %arg2: memref<160x960xbf16, #tpu.memory_space<vmem>>, %arg3: memref<960x196xf32, #tpu.memory_space<vmem>>, %arg4: memref<160x196xf32, #tpu.memory_space<vmem>>) attributes {dimension_semantics = [#tpu.dimension_semantics<arbitrary>], iteration_bounds = array<i64: 1>, scalar_prefetch = 0 : i64, scratch_operands = 0 : i64, tpu.core_type = #tpu.core_type<tc>, window_params = [{pipeline_mode = #tpu.pipeline_mode<synchronous>, transform_indices = @transform_0, window_bounds = array<i64: 1, 960>}, {transform_indices = @transform_1, window_bounds = array<i64: 160, 960>}, {pipeline_mode = #tpu.pipeline_mode<synchronous>, transform_indices = @transform_2, window_bounds = array<i64: 960, 196>}, {transform_indices = @transform_3, window_bounds = array<i64: 160, 196>}]} {
    %c0 = arith.constant 0 : index
    %c0_0 = arith.constant 0 : index
    %0 = vector.load %arg1[%c0, %c0_0] : memref<1x960xf32, #tpu.memory_space<vmem>>, vector<1x960xf32>
    %1 = arith.negf %0 : vector<1x960xf32>
    %2 = math.exp %1 : vector<1x960xf32>
    %cst = arith.constant 1.000000e+00 : f32
    %3 = vector.broadcast %cst : f32 to vector<1x960xf32>
    %4 = arith.addf %3, %2 : vector<1x960xf32>
    %5 = arith.divf %3, %4 : vector<1x960xf32>
    %c0_1 = arith.constant 0 : index
    %c0_2 = arith.constant 0 : index
    %6 = vector.load %arg2[%c0_1, %c0_2] : memref<160x960xbf16, #tpu.memory_space<vmem>>, vector<160x960xbf16>
    %7 = arith.extf %6 : vector<160x960xbf16> to vector<160x960xf32>
    %8 = vector.broadcast %5 : vector<1x960xf32> to vector<160x960xf32>
    %9 = arith.mulf %7, %8 : vector<160x960xf32>
    %c0_3 = arith.constant 0 : index
    %c0_4 = arith.constant 0 : index
    %10 = vector.load %arg3[%c0_3, %c0_4] : memref<960x196xf32, #tpu.memory_space<vmem>>, vector<960x196xf32>
    %cst_5 = arith.constant dense<0.000000e+00> : vector<160x196xf32>
    %11 = tpu.matmul %9, %10, %cst_5 {dimension_numbers = #tpu.dot_dimension_numbers<[1], [0], [0], [1], [0, 0, 1, 1], [], []>} : vector<160x960xf32>, vector<960x196xf32>, vector<160x196xf32> -> vector<160x196xf32>
    %c0_6 = arith.constant 0 : index
    %c0_7 = arith.constant 0 : index
    %12 = vector.load %arg4[%c0_6, %c0_7] : memref<160x196xf32, #tpu.memory_space<vmem>>, vector<160x196xf32>
    tpu.vector_store %arg4[%c0_6, %c0_7], %11 {strides = array<i32>} : memref<160x196xf32, #tpu.memory_space<vmem>>, vector<160x196xf32>,
    return
  }
  func.func @transform_0(%arg0: i32) -> (i32, i32) {
    %c0_i32 = arith.constant 0 : i32
    %c0_i32_0 = arith.constant 0 : i32
    %c0_i32_1 = arith.constant 0 : i32
    return %c0_i32, %c0_i32_0 : i32, i32
  }
  func.func @transform_1(%arg0: i32) -> (i32, i32) {
    %c0_i32 = arith.constant 0 : i32
    %c0_i32_0 = arith.constant 0 : i32
    return %arg0, %c0_i32 : i32, i32
  }
  func.func @transform_2(%arg0: i32) -> (i32, i32) {
    %c0_i32 = arith.constant 0 : i32
    %c0_i32_0 = arith.constant 0 : i32
    %c0_i32_1 = arith.constant 0 : i32
    return %c0_i32, %c0_i32_0 : i32, i32
  }
  func.func @transform_3(%arg0: i32) -> (i32, i32) {
    %c0_i32 = arith.constant 0 : i32
    %c0_i32_0 = arith.constant 0 : i32
    return %arg0, %c0_i32 : i32, i32
  }
}

</mosaic_0001>

<bundles_post_ra>
// kernel: se_gate_conv1x1.1
= control target key start
LH: loop header
LB: loop body
LE: loop exit
PB: predicated region body
PF: predicated region fallthrough
CT: control target
= control target key end

     0   :  { %vm702_vm0 = vcmask 523264   ;;  %vm1504_vm1 = vcmask 556032   ;;  %s4599_s2 = inlined_call_operand.vmem [shape: f32[960,196], index: 2, kind: input, shape index: {}]   ;;  %s4600_s0 = inlined_call_operand.vmem [shape: f32[1,960], index: 0, kind: input, shape index: {}]   ;;  %s4601_s1 = inlined_call_operand.vmem [shape: bf16[160,960], index: 1, kind: input, shape index: {}]   ;;  %s4602_s3 = inlined_call_operand.vmem [shape: f32[160,196], index: 3, kind: output, shape index: {}]  }
   0x1   :  { %v463_v0 = vld [vmem:[%s4599_s2 + $0x8] sm:$0xff]  ;;  %v465_v1 = vld [vmem:[%s4599_s2 + $0x18] sm:$0xff]  ;;  %v462_v5 = vld [vmem:[%s4599_s2] sm:$0xff] }
   0x2   :  { %v591_v2 = vld [vmem:[%s4599_s2 + $0x408] sm:$0xff]  ;;  %v1569_v3 = vpack.c.bf16 %v465_v1, %v463_v0  ;;  %v593_v4 = vld [vmem:[%s4599_s2 + $0x418] sm:$0xff]  ;;  %v464_v6 = vld [vmem:[%s4599_s2 + $0x10] sm:$0xff] }
   0x3   :  { %v1697_v7 = vpack.c.bf16 %v593_v4, %v591_v2  ;;  %v1571_v8 = vpack.c.bf16 %v464_v6, %v462_v5  ;;  %v590_v9 = vld [vmem:[%s4599_s2 + $0x400] sm:$0xff]  ;;  %v592_v10 = vld [vmem:[%s4599_s2 + $0x410] sm:$0xff]  ;;  %v467_v11 = vld [vmem:[%s4599_s2 + $0x28] sm:$0xff] }
   0x4   :  { %1570 = vmatprep.subr.bf16.mxu1 %v1569_v3  ;;  %v1699_v12 = vpack.c.bf16 %v592_v10, %v590_v9  ;;  %v469_v13 = vld [vmem:[%s4599_s2 + $0x38] sm:$0xff]  ;;  %v595_v14 = vld [vmem:[%s4599_s2 + $0x428] sm:$0xff]  ;;  %v466_v18 = vld [vmem:[%s4599_s2 + $0x20] sm:$0xff] }
   0x5   :  { %v597_v15 = vld [vmem:[%s4599_s2 + $0x438] sm:$0xff]  ;;  %1698 = vmatprep.subr.bf16.mxu0 %v1697_v7  ;;  %1572 = vmatpush1.bf16.msra.mxu1 %v1571_v8  ;;  %v1573_v16 = vpack.c.bf16 %v469_v13, %v467_v11  ;;  %v468_v19 = vld [vmem:[%s4599_s2 + $0x30] sm:$0xff]  ;;  %v594_v20 = vld [vmem:[%s4599_s2 + $0x420] sm:$0xff] }
   0x6   :  { %v1701_v17 = vpack.c.bf16 %v597_v15, %v595_v14  ;;  %1700 = vmatpush1.bf16.msra.mxu0 %v1699_v12  ;;  %v1575_v21 = vpack.c.bf16 %v468_v19, %v466_v18  ;;  %v596_v22 = vld [vmem:[%s4599_s2 + $0x430] sm:$0xff]  ;;  %v471_v23 = vld [vmem:[%s4599_s2 + $0x48] sm:$0xff]  ;;  %v473_v24 = vld [vmem:[%s4599_s2 + $0x58] sm:$0xff] }
   0x7   :  { %1574 = vmatprep.subr.bf16.mxu1 %v1573_v16  ;;  %v1703_v25 = vpack.c.bf16 %v596_v22, %v594_v20  ;;  %v1577_v26 = vpack.c.bf16 %v473_v24, %v471_v23  ;;  %v599_v27 = vld [vmem:[%s4599_s2 + $0x448] sm:$0xff]  ;;  %v601_v28 = vld [vmem:[%s4599_s2 + $0x458] sm:$0xff]  ;;  %v470_v29 = vld [vmem:[%s4599_s2 + $0x40] sm:$0xff] }
   0x8   :  { %1702 = vmatprep.subr.bf16.mxu0 %v1701_v17  ;;  %v1705_v30 = vpack.c.bf16 %v601_v28, %v599_v27  ;;  %v472_v31 = vld [vmem:[%s4599_s2 + $0x50] sm:$0xff]  ;;  %v598_v32 = vld [vmem:[%s4599_s2 + $0x440] sm:$0xff]  ;;  %v475_v35 = vld [vmem:[%s4599_s2 + $0x68] sm:$0xff] }
   0x9   :  { %v600_v33 = vld [vmem:[%s4599_s2 + $0x450] sm:$0xff]  ;;  %1576 = vmatpush1.bf16.msra.mxu1 %v1575_v21  ;;  %v1579_v34 = vpack.c.bf16 %v472_v31, %v470_v29  ;;  %v477_v36 = vld [vmem:[%s4599_s2 + $0x78] sm:$0xff]  ;;  %v603_v37 = vld [vmem:[%s4599_s2 + $0x468] sm:$0xff] }
   0xa   :  { %1704 = vmatpush1.bf16.msra.mxu0 %v1703_v25  ;;  %1578 = vmatprep.subr.bf16.mxu1 %v1577_v26  ;;  %v1707_v38 = vpack.c.bf16 %v600_v33, %v598_v32  ;;  %v1581_v39 = vpack.c.bf16 %v477_v36, %v475_v35  ;;  %v605_v40 = vld [vmem:[%s4599_s2 + $0x478] sm:$0xff]  ;;  %v474_v41 = vld [vmem:[%s4599_s2 + $0x60] sm:$0xff]  ;;  %v476_v42 = vld [vmem:[%s4599_s2 + $0x70] sm:$0xff] }
   0xb   :  { %1706 = vmatprep.subr.bf16.mxu0 %v1705_v30  ;;  %v1709_v43 = vpack.c.bf16 %v605_v40, %v603_v37  ;;  %v602_v44 = vld [vmem:[%s4599_s2 + $0x460] sm:$0xff]  ;;  %v604_v45 = vld [vmem:[%s4599_s2 + $0x470] sm:$0xff]  ;;  %v479_v46 = vld [vmem:[%s4599_s2 + $0x88] sm:$0xff]  ;;  %v1583_v50 = vpack.c.bf16 %v476_v42, %v474_v41 }
   0xc   :  { %v481_v47 = vld [vmem:[%s4599_s2 + $0x98] sm:$0xff]  ;;  %v607_v48 = vld [vmem:[%s4599_s2 + $0x488] sm:$0xff]  ;;  %v1711_v51 = vpack.c.bf16 %v604_v45, %v602_v44  ;;  %v478_v53 = vld [vmem:[%s4599_s2 + $0x80] sm:$0xff] }
   0xd   :  { %v609_v49 = vld [vmem:[%s4599_s2 + $0x498] sm:$0xff]  ;;  %1580 = vmatpush1.bf16.msra.mxu1 %v1579_v34  ;;  %v1585_v52 = vpack.c.bf16 %v481_v47, %v479_v46  ;;  %v480_v54 = vld [vmem:[%s4599_s2 + $0x90] sm:$0xff]  ;;  %v606_v55 = vld [vmem:[%s4599_s2 + $0x480] sm:$0xff] }
   0xe   :  { %1708 = vmatpush1.bf16.msra.mxu0 %v1707_v38  ;;  %1582 = vmatprep.subr.bf16.mxu1 %v1581_v39  ;;  %v1713_v56 = vpack.c.bf16 %v609_v49, %v607_v48  ;;  %v608_v57 = vld [vmem:[%s4599_s2 + $0x490] sm:$0xff]  ;;  %v483_v58 = vld [vmem:[%s4599_s2 + $0xa8] sm:$0xff]  ;;  %v485_v59 = vld [vmem:[%s4599_s2 + $0xb8] sm:$0xff]  ;;  %v1587_v62 = vpack.c.bf16 %v480_v54, %v478_v53 }
   0xf   :  { %1710 = vmatprep.subr.bf16.mxu0 %v1709_v43  ;;  %v611_v60 = vld [vmem:[%s4599_s2 + $0x4a8] sm:$0xff]  ;;  %v613_v61 = vld [vmem:[%s4599_s2 + $0x4b8] sm:$0xff]  ;;  %v1715_v63 = vpack.c.bf16 %v608_v57, %v606_v55  ;;  %v1589_v0 = vpack.c.bf16 %v485_v59, %v483_v58  ;;  %v482_v1 = vld [vmem:[%s4599_s2 + $0xa0] sm:$0xff] }
  0x10   :  { %v484_v2 = vld [vmem:[%s4599_s2 + $0xb0] sm:$0xff]  ;;  %v610_v3 = vld [vmem:[%s4599_s2 + $0x4a0] sm:$0xff]  ;;  %v1717_v4 = vpack.c.bf16 %v613_v61, %v611_v60  ;;  %v487_v6 = vld [vmem:[%s4599_s2 + $0xc8] sm:$0xff] }
  0x11   :  { %1584 = vmatpush1.bf16.msra.mxu1 %v1583_v50  ;;  %v612_v5 = vld [vmem:[%s4599_s2 + $0x4b0] sm:$0xff]  ;;  %v489_v7 = vld [vmem:[%s4599_s2 + $0xd8] sm:$0xff]  ;;  %v615_v8 = vld [vmem:[%s4599_s2 + $0x4c8] sm:$0xff]  ;;  %v1591_v10 = vpack.c.bf16 %v484_v2, %v482_v1 }
  0x12   :  { %1712 = vmatpush1.bf16.msra.mxu0 %v1711_v51  ;;  %1586 = vmatprep.subr.bf16.mxu1 %v1585_v52  ;;  %v617_v9 = vld [vmem:[%s4599_s2 + $0x4d8] sm:$0xff]  ;;  %v1719_v11 = vpack.c.bf16 %v612_v5, %v610_v3  ;;  %v1593_v12 = vpack.c.bf16 %v489_v7, %v487_v6  ;;  %v486_v13 = vld [vmem:[%s4599_s2 + $0xc0] sm:$0xff]  ;;  %v488_v14 = vld [vmem:[%s4599_s2 + $0xd0] sm:$0xff] }
  0x13   :  { %1714 = vmatprep.subr.bf16.mxu0 %v1713_v56  ;;  %v614_v15 = vld [vmem:[%s4599_s2 + $0x4c0] sm:$0xff]  ;;  %v1721_v16 = vpack.c.bf16 %v617_v9, %v615_v8  ;;  %v616_v17 = vld [vmem:[%s4599_s2 + $0x4d0] sm:$0xff]  ;;  %v491_v18 = vld [vmem:[%s4599_s2 + $0xe8] sm:$0xff]  ;;  %v1595_v22 = vpack.c.bf16 %v488_v14, %v486_v13 }
  0x14   :  { %v493_v19 = vld [vmem:[%s4599_s2 + $0xf8] sm:$0xff]  ;;  %v619_v20 = vld [vmem:[%s4599_s2 + $0x4e8] sm:$0xff]  ;;  %v1723_v23 = vpack.c.bf16 %v616_v17, %v614_v15  ;;  %v490_v25 = vld [vmem:[%s4599_s2 + $0xe0] sm:$0xff] }
  0x15   :  { %1588 = vmatpush1.bf16.msra.mxu1 %v1587_v62  ;;  %v621_v21 = vld [vmem:[%s4599_s2 + $0x4f8] sm:$0xff]  ;;  %v1597_v24 = vpack.c.bf16 %v493_v19, %v491_v18  ;;  %v492_v26 = vld [vmem:[%s4599_s2 + $0xf0] sm:$0xff]  ;;  %v618_v27 = vld [vmem:[%s4599_s2 + $0x4e0] sm:$0xff] }
  0x16   :  { %1716 = vmatpush1.bf16.msra.mxu0 %v1715_v63  ;;  %1590 = vmatprep.subr.bf16.mxu1 %v1589_v0  ;;  %v1725_v28 = vpack.c.bf16 %v621_v21, %v619_v20  ;;  %v620_v29 = vld [vmem:[%s4599_s2 + $0x4f0] sm:$0xff]  ;;  %v495_v30 = vld [vmem:[%s4599_s2 + $0x108] sm:$0xff]  ;;  %v497_v31 = vld [vmem:[%s4599_s2 + $0x118] sm:$0xff]  ;;  %v1599_v34 = vpack.c.bf16 %v492_v26, %v490_v25  ;;  %v262_v0 = vlaneseq }
  0x17   :  { %1718 = vmatprep.subr.bf16.mxu0 %v1717_v4  ;;  %v623_v32 = vld [vmem:[%s4599_s2 + $0x508] sm:$0xff]  ;;  %v625_v33 = vld [vmem:[%s4599_s2 + $0x518] sm:$0xff]  ;;  %v1727_v35 = vpack.c.bf16 %v620_v29, %v618_v27  ;;  %v1601_v36 = vpack.c.bf16 %v497_v31, %v495_v30  ;;  %v494_v37 = vld [vmem:[%s4599_s2 + $0x100] sm:$0xff] }
  0x18   :  { %v496_v38 = vld [vmem:[%s4599_s2 + $0x110] sm:$0xff]  ;;  %v622_v39 = vld [vmem:[%s4599_s2 + $0x500] sm:$0xff]  ;;  %v1729_v40 = vpack.c.bf16 %v625_v33, %v623_v32  ;;  %v499_v42 = vld [vmem:[%s4599_s2 + $0x128] sm:$0xff] }
  0x19   :  { %1592 = vmatpush1.bf16.msra.mxu1 %v1591_v10  ;;  %v624_v41 = vld [vmem:[%s4599_s2 + $0x510] sm:$0xff]  ;;  %v501_v43 = vld [vmem:[%s4599_s2 + $0x138] sm:$0xff]  ;;  %v627_v44 = vld [vmem:[%s4599_s2 + $0x528] sm:$0xff]  ;;  %v1603_v46 = vpack.c.bf16 %v496_v38, %v494_v37 }
  0x1a   :  { %1720 = vmatpush1.bf16.msra.mxu0 %v1719_v11  ;;  %1594 = vmatprep.subr.bf16.mxu1 %v1593_v12  ;;  %v629_v45 = vld [vmem:[%s4599_s2 + $0x538] sm:$0xff]  ;;  %v1731_v47 = vpack.c.bf16 %v624_v41, %v622_v39  ;;  %v1605_v48 = vpack.c.bf16 %v501_v43, %v499_v42  ;;  %v498_v49 = vld [vmem:[%s4599_s2 + $0x120] sm:$0xff]  ;;  %v500_v50 = vld [vmem:[%s4599_s2 + $0x130] sm:$0xff] }
  0x1b   :  { %1722 = vmatprep.subr.bf16.mxu0 %v1721_v16  ;;  %v626_v51 = vld [vmem:[%s4599_s2 + $0x520] sm:$0xff]  ;;  %v1733_v52 = vpack.c.bf16 %v629_v45, %v627_v44  ;;  %v628_v53 = vld [vmem:[%s4599_s2 + $0x530] sm:$0xff]  ;;  %v503_v54 = vld [vmem:[%s4599_s2 + $0x148] sm:$0xff]  ;;  %v1607_v58 = vpack.c.bf16 %v500_v50, %v498_v49  ;;  %v2259_v16 = vshrl.u32 %v262_v0, 7 }
  0x1c   :  { %v505_v55 = vld [vmem:[%s4599_s2 + $0x158] sm:$0xff]  ;;  %v631_v56 = vld [vmem:[%s4599_s2 + $0x548] sm:$0xff]  ;;  %v1735_v59 = vpack.c.bf16 %v628_v53, %v626_v51  ;;  %v502_v61 = vld [vmem:[%s4599_s2 + $0x140] sm:$0xff] }
  0x1d   :  { %1596 = vmatpush1.bf16.msra.mxu1 %v1595_v22  ;;  %v633_v57 = vld [vmem:[%s4599_s2 + $0x558] sm:$0xff]  ;;  %v1609_v60 = vpack.c.bf16 %v505_v55, %v503_v54  ;;  %v504_v62 = vld [vmem:[%s4599_s2 + $0x150] sm:$0xff]  ;;  %v630_v63 = vld [vmem:[%s4599_s2 + $0x540] sm:$0xff]  ;;  %4645 = vst [vmem:[#allocation2_spill] sm:$0xff] %v2259_v16 }
  0x1e   :  { %1724 = vmatpush1.bf16.msra.mxu0 %v1723_v23  ;;  %1598 = vmatprep.subr.bf16.mxu1 %v1597_v24  ;;  %v1737_v1 = vpack.c.bf16 %v633_v57, %v631_v56  ;;  %v632_v2 = vld [vmem:[%s4599_s2 + $0x550] sm:$0xff]  ;;  %v507_v3 = vld [vmem:[%s4599_s2 + $0x168] sm:$0xff]  ;;  %v509_v4 = vld [vmem:[%s4599_s2 + $0x178] sm:$0xff]  ;;  %v1611_v7 = vpack.c.bf16 %v504_v62, %v502_v61 }
  0x1f   :  { %1726 = vmatprep.subr.bf16.mxu0 %v1725_v28  ;;  %v635_v5 = vld [vmem:[%s4599_s2 + $0x568] sm:$0xff]  ;;  %v637_v6 = vld [vmem:[%s4599_s2 + $0x578] sm:$0xff]  ;;  %v2232_v8 = vld [vmem:[%s4599_s2 + $0x160] sm:$0xff]  ;;  %v1739_v11 = vpack.c.bf16 %v632_v2, %v630_v63  ;;  %v1613_v12 = vpack.c.bf16 %v509_v4, %v507_v3 }
  0x20   :  { %v2237_v9 = vld [vmem:[%s4599_s2 + $0x170] sm:$0xff]  ;;  %v2242_v10 = vld [vmem:[%s4599_s2 + $0x560] sm:$0xff]  ;;  %v2252_v14 = vld [vmem:[%s4599_s2 + $0x188] sm:$0xff]  ;;  %v1741_v17 = vpack.c.bf16 %v637_v6, %v635_v5 }
  0x21   :  { %1600 = vmatpush1.bf16.msra.mxu1 %v1599_v34  ;;  %v2247_v13 = vld [vmem:[%s4599_s2 + $0x570] sm:$0xff]  ;;  %v2257_v15 = vld [vmem:[%s4599_s2 + $0x198] sm:$0xff]  ;;  %v2264_v18 = vld [vmem:[%s4599_s2 + $0x588] sm:$0xff]  ;;  %v1615_v30 = vpack.c.bf16 %v2237_v9, %v2232_v8 }
  0x22   :  { %1728 = vmatpush1.bf16.msra.mxu0 %v1727_v35  ;;  %1602 = vmatprep.subr.bf16.mxu1 %v1601_v36  ;;  %v2269_v19 = vld [vmem:[%s4599_s2 + $0x598] sm:$0xff]  ;;  %v14_v20 = vld [vmem:[%s4600_s0] sm:$0xff]  ;;  %v2282_v22 = vld [vmem:[%s4599_s2 + $0x190] sm:$0xff]  ;;  %v1743_v37 = vpack.c.bf16 %v2247_v13, %v2242_v10  ;;  %v1617_v38 = vpack.c.bf16 %v2257_v15, %v2252_v14 }
  0x23   :  { %1730 = vmatprep.subr.bf16.mxu0 %v1729_v40  ;;  %v2277_v21 = vld [vmem:[%s4599_s2 + $0x180] sm:$0xff]  ;;  %v2292_v24 = vld [vmem:[%s4599_s2 + $0x590] sm:$0xff]  ;;  %v2297_v25 = vld [vmem:[%s4599_s2 + $0x1a8] sm:$0xff]  ;;  %v1548_v29 = vmul.f32 -1.442695, %v14_v20 }
  0x24   :  { %v2287_v23 = vld [vmem:[%s4599_s2 + $0x580] sm:$0xff]  ;;  %v2302_v26 = vld [vmem:[%s4599_s2 + $0x1b8] sm:$0xff]  ;;  %v2307_v27 = vld [vmem:[%s4599_s2 + $0x5a8] sm:$0xff] }
  0x25   :  { %1604 = vmatpush1.bf16.msra.mxu1 %v1603_v46  ;;  %v2312_v28 = vld [vmem:[%s4599_s2 + $0x5b8] sm:$0xff]  ;;  %v2319_v31 = vld [vmem:[%s4599_s2 + $0x1a0] sm:$0xff]  ;;  %v2324_v32 = vld [vmem:[%s4599_s2 + $0x1b0] sm:$0xff]  ;;  %1929 = vpow2.f32 %v1548_v29  ;;  %v1747_v2 = vpack.c.bf16 %v2292_v24, %v2287_v23  ;;  %v1621_v3 = vpack.c.bf16 %v2302_v26, %v2297_v25 }
  0x26   :  { %1732 = vmatpush1.bf16.msra.mxu0 %v1731_v47  ;;  %1606 = vmatprep.subr.bf16.mxu1 %v1605_v48  ;;  %v2329_v33 = vld [vmem:[%s4599_s2 + $0x5a0] sm:$0xff]  ;;  %v2334_v34 = vld [vmem:[%s4599_s2 + $0x5b0] sm:$0xff]  ;;  %v2339_v35 = vld [vmem:[%s4599_s2 + $0x1c8] sm:$0xff]  ;;  %v1745_v48 = vpack.c.bf16 %v2269_v19, %v2264_v18  ;;  %v1749_v4 = vpack.c.bf16 %v2312_v28, %v2307_v27 }
  0x27   :  { %1734 = vmatprep.subr.bf16.mxu0 %v1733_v52  ;;  %v2344_v36 = vld [vmem:[%s4599_s2 + $0x1d8] sm:$0xff]  ;;  %v2353_v39 = vld [vmem:[%s4599_s2 + $0x5c8] sm:$0xff]  ;;  %v2363_v41 = vld [vmem:[%s4599_s2 + $0x1c0] sm:$0xff] }
  0x28   :  { %v2358_v40 = vld [vmem:[%s4599_s2 + $0x5d8] sm:$0xff]  ;;  %v2368_v42 = vld [vmem:[%s4599_s2 + $0x1d0] sm:$0xff]  ;;  %v2373_v43 = vld [vmem:[%s4599_s2 + $0x5c0] sm:$0xff]  ;;  %v4655_v13 = vpack.c.bf16 %v2344_v36, %v2339_v35 }
  0x29   :  { %1608 = vmatpush1.bf16.msra.mxu1 %v1607_v58  ;;  %v2378_v44 = vld [vmem:[%s4599_s2 + $0x5d0] sm:$0xff]  ;;  %v2383_v45 = vld [vmem:[%s4599_s2 + $0x1e8] sm:$0xff]  ;;  %v2388_v46 = vld [vmem:[%s4599_s2 + $0x1f8] sm:$0xff]  ;;  %v4657_v35 = vpack.c.bf16 %v2358_v40, %v2353_v39 }
  0x2a   :  { %1736 = vmatpush1.bf16.msra.mxu0 %v1735_v59  ;;  %1610 = vmatprep.subr.bf16.mxu1 %v1609_v60  ;;  %v2396_v49 = vld [vmem:[%s4599_s2 + $0x5e8] sm:$0xff]  ;;  %v2401_v50 = vld [vmem:[%s4599_s2 + $0x5f8] sm:$0xff]  ;;  %v2406_v51 = vld [vmem:[%s4599_s2 + $0x1e0] sm:$0xff] }
  0x2b   :  { %1738 = vmatprep.subr.bf16.mxu0 %v1737_v1  ;;  %v2411_v52 = vld [vmem:[%s4599_s2 + $0x1f0] sm:$0xff]  ;;  %v2416_v53 = vld [vmem:[%s4599_s2 + $0x5e0] sm:$0xff]  ;;  %v2439_v60 = vld [vmem:[%s4599_s2 + $0x208] sm:$0xff]  ;;  %v1619_v1 = vpack.c.bf16 %v2282_v22, %v2277_v21 }
  0x2c   :  { %v2421_v54 = vld [vmem:[%s4599_s2 + $0x5f0] sm:$0xff]  ;;  %v2426_v55 = vld [vmem:[%s4601_s1] sm:$0xff]  ;;  %v2444_v61 = vld [vmem:[%s4599_s2 + $0x218] sm:$0xff] }
  0x2d   :  { %1612 = vmatpush1.bf16.msra.mxu1 %v1611_v7  ;;  %v2434_v59 = vld [vmem:[%s4601_s1 + $0x10] sm:$0xff]  ;;  %v2460_v5 = vld [vmem:[%s4599_s2 + $0x608] sm:$0xff]  ;;  %v2465_v6 = vld [vmem:[%s4599_s2 + $0x618] sm:$0xff] }
  0x2e   :  { %1740 = vmatpush1.bf16.msra.mxu0 %v1739_v11  ;;  %1614 = vmatprep.subr.bf16.mxu1 %v1613_v12  ;;  %v2470_v7 = vld [vmem:[%s4599_s2 + $0x200] sm:$0xff]  ;;  %v2475_v8 = vld [vmem:[%s4599_s2 + $0x210] sm:$0xff]  ;;  %v1623_v12 = vpack.c.bf16 %v2324_v32, %v2319_v31  ;;  %v2511_v18 = vld [vmem:[%s4599_s2 + $0x238] sm:$0xff] }
  0x2f   :  { %1742 = vmatprep.subr.bf16.mxu0 %v1741_v17  ;;  %v2480_v9 = vld [vmem:[%s4599_s2 + $0x600] sm:$0xff]  ;;  %v2485_v10 = vld [vmem:[%s4599_s2 + $0x610] sm:$0xff]  ;;  %v2506_v17 = vld [vmem:[%s4599_s2 + $0x228] sm:$0xff]  ;;  %v1930_v19 = vpop.eup %1929 }
  0x30   :  { %v2490_v11 = vld [vmem:[%s4601_s1 + $0x20] sm:$0xff]  ;;  %v2501_v15 = vld [vmem:[%s4601_s1 + $0x30] sm:$0xff]  ;;  %v2552_v32 = vld [vmem:[%s4599_s2 + $0x628] sm:$0xff]  ;;  %v18_v56 = vadd.f32 1.0, %v1930_v19  ;;  %v4654_v19 = vpack.c.bf16 %v2334_v34, %v2329_v33 }
  0x31   :  { %1616 = vmatpush1.bf16.msra.mxu1 %v1615_v30  ;;  %v2525_v24 = vld [vmem:[%s4599_s2 + $0x220] sm:$0xff]  ;;  %v2530_v25 = vld [vmem:[%s4599_s2 + $0x230] sm:$0xff]  ;;  %4648 = vst [vmem:[#allocation5_spill] sm:$0xff] %v2552_v32  ;;  %v2577_v31 = vld [vmem:[%s4599_s2 + $0x248] sm:$0xff] }
  0x32   :  { %1744 = vmatpush1.bf16.msra.mxu0 %v1743_v37  ;;  %1618 = vmatprep.subr.bf16.mxu1 %v1617_v38  ;;  %4646 = vst [vmem:[#allocation3_spill] sm:$0xff] %v2525_v24  ;;  %4647 = vst [vmem:[#allocation4_spill] sm:$0xff] %v2530_v25  ;;  %v2535_v26 = vld [vmem:[%s4601_s1 + $0x40] sm:$0xff]  ;;  %v2540_v27 = vld [vmem:[%s4601_s1 + $0x50] sm:$0xff]  ;;  %1931 = vrcp.f32 %v18_v56  ;;  %v4659_v56 = vpack.c.bf16 %v2368_v42, %v2363_v41 }
  0x33   :  { %1746 = vmatprep.subr.bf16.mxu0 %v1745_v48  ;;  %v2557_v37 = vld [vmem:[%s4599_s2 + $0x638] sm:$0xff]  ;;  %v2562_v38 = vld [vmem:[%s4599_s2 + $0x620] sm:$0xff]  ;;  %v2567_v48 = vld [vmem:[%s4599_s2 + $0x630] sm:$0xff] }
  0x34   :  { %4649 = vst [vmem:[#allocation6_spill] sm:$0xff] %v2562_v38  ;;  %4650 = vst [vmem:[#allocation7_spill] sm:$0xff] %v2567_v48  ;;  %v2582_v58 = vld [vmem:[%s4599_s2 + $0x258] sm:$0xff]  ;;  %v2592_v0 = vld [vmem:[%s4599_s2 + $0x240] sm:$0xff] }
  0x35   :  { %1620 = vmatpush1.bf16.msra.mxu1 %v1619_v1  ;;  %v2587_v1 = vld [vmem:[%s4601_s1 + $0x60] sm:$0xff]  ;;  %v2597_v63 = vld [vmem:[%s4599_s2 + $0x250] sm:$0xff]  ;;  %v2634_v29 = vld [vmem:[%s4599_s2 + $0x268] sm:$0xff] }
  0x36   :  { %1748 = vmatpush1.bf16.msra.mxu0 %v1747_v2  ;;  %1622 = vmatprep.subr.bf16.mxu1 %v1621_v3  ;;  %v2609_v62 = vld [vmem:[%s4601_s1 + $0x70] sm:$0xff]  ;;  %v2614_v2 = vld [vmem:[%s4599_s2 + $0x648] sm:$0xff]  ;;  %v2619_v3 = vld [vmem:[%s4599_s2 + $0x658] sm:$0xff]  ;;  %4651 = vst [vmem:[#allocation8_spill] sm:$0xff] %v2634_v29 }
  0x37   :  { %1750 = vmatprep.subr.bf16.mxu0 %v1749_v4  ;;  %v2629_v30 = vld [vmem:[%s4601_s1 + $0x80] sm:$0xff]  ;;  %v2639_v4 = vld [vmem:[%s4599_s2 + $0x278] sm:$0xff]  ;;  %v2644_v47 = vld [vmem:[%s4601_s1 + $0x90] sm:$0xff] }
  0x38   :  { %v2654_v22 = vld [vmem:[%s4599_s2 + $0x640] sm:$0xff]  ;;  %v2659_v21 = vld [vmem:[%s4599_s2 + $0x650] sm:$0xff]  ;;  %v2689_v25 = vld [vmem:[%s4599_s2 + $0x288] sm:$0xff] }
  0x39   :  { %v2664_v57 = vld [vmem:[%s4599_s2 + $0x260] sm:$0xff]  ;;  %v2669_v28 = vld [vmem:[%s4599_s2 + $0x270] sm:$0xff]  ;;  %1624 = vmatpush1.bf16.msra.mxu1 %v1623_v12  ;;  %v2694_v12 = vld [vmem:[%s4599_s2 + $0x298] sm:$0xff] }
  0x3a   :  { %4652 = vst [vmem:[#allocation9_spill] sm:$0xff] %v2664_v57  ;;  %4653 = vst [vmem:[#allocation10_spill] sm:$0xff] %v2669_v28  ;;  %v2674_v23 = vld [vmem:[%s4601_s1 + $0xa0] sm:$0xff]  ;;  %v2684_v24 = vld [vmem:[%s4601_s1 + $0xb0] sm:$0xff]  ;;  %1752 = vmatpush1.bf16.msra.mxu0 %v4654_v19  ;;  %1626 = vmatprep.subr.bf16.mxu1 %v4655_v13 }
  0x3b   :  { %v2711_v32 = vld [vmem:[%s4599_s2 + $0x668] sm:$0xff]  ;;  %v2716_v33 = vld [vmem:[%s4599_s2 + $0x678] sm:$0xff]  ;;  %v2721_v34 = vld [vmem:[%s4599_s2 + $0x280] sm:$0xff]  ;;  %1754 = vmatprep.subr.bf16.mxu0 %v4657_v35  ;;  %v4664_v35 = vpack.c.bf16 %v2388_v46, %v2383_v45  ;;  %v4666_v45 = vpack.c.bf16 %v2401_v50, %v2396_v49 }
  0x3c   :  { %4656 = vst [vmem:[#allocation11_spill] sm:$0xff] %v2721_v34  ;;  %v2733_v38 = vld [vmem:[%s4599_s2 + $0x290] sm:$0xff]  ;;  %v2738_v20 = vld [vmem:[%s4599_s2 + $0x660] sm:$0xff]  ;;  %v2763_v40 = vld [vmem:[%s4599_s2 + $0x2a8] sm:$0xff] }
  0x3d   :  { %v2743_v39 = vld [vmem:[%s4599_s2 + $0x670] sm:$0xff]  ;;  %v2753_v13 = vld [vmem:[%s4601_s1 + $0xc0] sm:$0xff]  ;;  %4658 = vst [vmem:[#allocation12_spill] sm:$0xff] %v2763_v40  ;;  %1628 = vmatpush1.bf16.msra.mxu1 %v4659_v56  ;;  %v2777_v29 = vld [vmem:[%s4599_s2 + $0x2b8] sm:$0xff]  ;;  %v4663_v56 = vpack.c.bf16 %v2378_v44, %v2373_v43 }
  0x3e   :  { %v2758_v48 = vld [vmem:[%s4601_s1 + $0xd0] sm:$0xff]  ;;  %4660 = vst [vmem:[#allocation13_spill] sm:$0xff] %v2777_v29  ;;  %v2782_v41 = vld [vmem:[%s4599_s2 + $0x2a0] sm:$0xff]  ;;  %1630 = vmatprep.subr.bf16.mxu1 %v4664_v35  ;;  %v2813_v44 = vld [vmem:[%s4599_s2 + $0x688] sm:$0xff] }
  0x3f   :  { %4661 = vst [vmem:[#allocation14_spill] sm:$0xff] %v2782_v41  ;;  %v2787_v42 = vld [vmem:[%s4599_s2 + $0x2b0] sm:$0xff]  ;;  %1756 = vmatpush1.bf16.msra.mxu0 %v4663_v56  ;;  %v2803_v28 = vld [vmem:[%s4601_s1 + $0xe0] sm:$0xff]  ;;  %4665 = vst [vmem:[#allocation16_spill] sm:$0xff] %v2813_v44  ;;  %v4672_v56 = vpack.c.bf16 %v2411_v52, %v2406_v51  ;;  %v4675_v52 = vpack.c.bf16 %v2421_v54, %v2416_v53  ;;  %v4695_v41 = vunpack.c.h.bf16 %v2490_v11  ;;  %v4702_v44 = vunpack.c.l.bf16 %v2540_v27 }
  0x40   :  { %4662 = vst [vmem:[#allocation15_spill] sm:$0xff] %v2787_v42  ;;  %v2808_v43 = vld [vmem:[%s4601_s1 + $0xf0] sm:$0xff]  ;;  %1758 = vmatprep.subr.bf16.mxu0 %v4666_v45  ;;  %v2828_v57 = vld [vmem:[%s4599_s2 + $0x698] sm:$0xff]  ;;  %v2833_v49 = vld [vmem:[%s4599_s2 + $0x680] sm:$0xff]  ;;  %v4691_v42 = vunpack.c.h.bf16 %v2426_v55 }
  0x41   :  { %4667 = vst [vmem:[#allocation17_spill] sm:$0xff] %v2828_v57  ;;  %4668 = vst [vmem:[#allocation18_spill] sm:$0xff] %v2833_v49  ;;  %v2838_v50 = vld [vmem:[%s4599_s2 + $0x690] sm:$0xff]  ;;  %v2848_v36 = vld [vmem:[%s4599_s2 + $0x2c8] sm:$0xff]  ;;  %1632 = vmatpush1.bf16.msra.mxu1 %v4672_v56  ;;  %v4676_v56 = vpack.c.bf16 %v2444_v61, %v2439_v60  ;;  %v4679_v61 = vpack.c.bf16 %v2465_v6, %v2460_v5  ;;  %v4704_v57 = vunpack.c.h.bf16 %v2609_v62 }
  0x42   :  { %4669 = vst [vmem:[#allocation19_spill] sm:$0xff] %v2838_v50  ;;  %4670 = vst [vmem:[#allocation20_spill] sm:$0xff] %v2848_v36  ;;  %v2853_v14 = vld [vmem:[%s4599_s2 + $0x2d8] sm:$0xff]  ;;  %v2858_v45 = vld [vmem:[%s4601_s1 + $0x100] sm:$0xff] }
  0x43   :  { %4671 = vst [vmem:[#allocation21_spill] sm:$0xff] %v2853_v14  ;;  %v2871_v29 = vld [vmem:[%s4599_s2 + $0x2c0] sm:$0xff]  ;;  %v2876_v34 = vld [vmem:[%s4599_s2 + $0x2d0] sm:$0xff]  ;;  %1760 = vmatpush1.bf16.msra.mxu0 %v4675_v52  ;;  %1634 = vmatprep.subr.bf16.mxu1 %v4676_v56  ;;  %v2899_v53 = vld [vmem:[%s4599_s2 + $0x6a8] sm:$0xff]  ;;  %v4689_v52 = vsub.s32 0, %v2259_v16 }
  0x44   :  { %4673 = vst [vmem:[#allocation22_spill] sm:$0xff] %v2871_v29  ;;  %4674 = vst [vmem:[#allocation23_spill] sm:$0xff] %v2876_v34  ;;  %v2881_v51 = vld [vmem:[%s4601_s1 + $0x110] sm:$0xff]  ;;  %v2904_v54 = vld [vmem:[%s4599_s2 + $0x6b8] sm:$0xff]  ;;  %1762 = vmatprep.subr.bf16.mxu0 %v4679_v61  ;;  %v2954_v61 = vpop.eup %1931  ;;  %v4687_v29 = vsub.s32 1, %v2259_v16 }
  0x45   :  { %4677 = vst [vmem:[#allocation24_spill] sm:$0xff] %v2899_v53  ;;  %4678 = vst [vmem:[#allocation25_spill] sm:$0xff] %v2904_v54  ;;  %v2909_v60 = vld [vmem:[%s4601_s1 + $0x120] sm:$0xff]  ;;  %v2922_v46 = vld [vmem:[%s4599_s2 + $0x2e8] sm:$0xff]  ;;  %v4694_v54 = vunpack.c.l.bf16 %v2434_v59 }
  0x46   :  { %4680 = vst [vmem:[#allocation26_spill] sm:$0xff] %v2922_v46  ;;  %v2927_v40 = vld [vmem:[%s4599_s2 + $0x2f8] sm:$0xff]  ;;  %v2932_v5 = vld [vmem:[%s4601_s1 + $0x130] sm:$0xff]  ;;  %v2941_v19 = vld [vmem:[%s4599_s2 + $0x6a0] sm:$0xff]  ;;  %v2980_v34 = vrot.slane %v2954_v61, %v4687_v29  ;;  %v4688_v46 = vsub.s32 5, %v2259_v16 }
  0x47   :  { %4681 = vst [vmem:[#allocation27_spill] sm:$0xff] %v2927_v40  ;;  %4682 = vst [vmem:[#allocation28_spill] sm:$0xff] %v2941_v19  ;;  %v2946_v35 = vld [vmem:[%s4599_s2 + $0x6b0] sm:$0xff]  ;;  %v2952_v6 = vld [vmem:[%s4599_s2 + $0x2e0] sm:$0xff]  ;;  %v2990_v19 = vrot.slane %v2954_v61, %v4689_v52  ;;  %v4692_v52 = vunpack.c.h.bf16 %v2434_v59  ;;  %v4698_v59 = vunpack.c.l.bf16 %v2501_v15 }
  0x48   :  { %4683 = vst [vmem:[#allocation29_spill] sm:$0xff] %v2946_v35  ;;  %4684 = vst [vmem:[#allocation30_spill] sm:$0xff] %v2952_v6  ;;  %v2964_v36 = vld [vmem:[%s4599_s2 + $0x2f0] sm:$0xff]  ;;  %v2970_v14 = vld [vmem:[%s4601_s1 + $0x140] sm:$0xff]  ;;  %v2985_v40 = vrot.slane %v2954_v61, %v4688_v46  ;;  %v4690_v35 = vsub.s32 4, %v2259_v16  ;;  %v303_v49 = vmul.f32 %v2980_v34, %v4691_v42  ;;  %v311_v42 = vmul.f32 %v2980_v34, %v4695_v41 }
  0x49   :  { %4685 = vst [vmem:[#allocation31_spill] sm:$0xff] %v2954_v61  ;;  %4686 = vst [vmem:[#allocation32_spill] sm:$0xff] %v2964_v36  ;;  %v2975_v56 = vld [vmem:[%s4601_s1 + $0x150] sm:$0xff]  ;;  %v3017_v46 = vld [vmem:[%s4601_s1 + $0x160] sm:$0xff]  ;;  %v4696_v6 = vunpack.c.h.bf16 %v2501_v15  ;;  %v4699_v41 = vunpack.c.h.bf16 %v2535_v26 }
  0x4a   :  { %v2995_v53 = vrot.slane %v2954_v61, %v4690_v35  ;;  %v307_v16 = vmul.f32 %v2985_v40, %v4692_v52  ;;  %v4693_v35 = vunpack.c.l.bf16 %v2426_v55  ;;  %v4697_v55 = vunpack.c.l.bf16 %v2490_v11  ;;  %v3034_v36 = vld [vmem:[%s4601_s1 + $0x170] sm:$0xff]  ;;  %827 = vmatprep.mubr.f32.mxu1 %v303_v49 }
  0x4b   :  { %v315_v52 = vmul.f32 %v2985_v40, %v4696_v6  ;;  %v319_v50 = vmul.f32 %v2980_v34, %v4699_v41  ;;  %v4700_v6 = vunpack.c.h.bf16 %v2540_v27  ;;  %v4703_v49 = vunpack.c.h.bf16 %v2587_v1 }
  0x4c   :  { %v302_v61 = vmul.f32 %v2990_v19, %v4693_v35  ;;  %v306_v29 = vmul.f32 %v2995_v53, %v4694_v54  ;;  %v310_v35 = vmul.f32 %v2990_v19, %v4697_v55  ;;  %v314_v54 = vmul.f32 %v2995_v53, %v4698_v59  ;;  %1197 = vmatprep.mubr.f32.mxu0 %v307_v16 }
  0x4d   :  { %v323_v11 = vmul.f32 %v2985_v40, %v4700_v6  ;;  %v4701_v55 = vunpack.c.l.bf16 %v2535_v26  ;;  %v322_v16 = vmul.f32 %v2995_v53, %v4702_v44  ;;  %v3052_v41 = vmul.f32 %v2980_v34, %v4703_v49 }
  0x4e   :  { %828 = vmatmul.mubr.f32.vlgmr.msra.gmra.mrb[0].mxu1 %v302_v61  ;;  %1198 = vmatmul.mubr.f32.vlgmr.msra.gmra.mrb[0].mxu0 %v306_v29  ;;  %v3057_v6 = vmul.f32 %v2985_v40, %v4704_v57  ;;  %v4705_v61 = vpack.c.bf16 %v2475_v8, %v2470_v7  ;;  %v4706_v27 = vpack.c.bf16 %v2485_v10, %v2480_v9  ;;  %v4707_v44 = vunpack.c.l.bf16 %v2587_v1  ;;  %v3085_v8 = vld [vmem:[%s4601_s1 + $0x180] sm:$0xff] }
  0x4f   :  { %v318_v15 = vmul.f32 %v2990_v19, %v4701_v55  ;;  %v4708_v55 = vunpack.c.l.bf16 %v2609_v62  ;;  %v4709_v49 = vunpack.c.h.bf16 %v2629_v30  ;;  %833 = vmatprep.mubr.f32.mxu1 %v311_v42  ;;  %1203 = vmatprep.mubr.f32.mxu0 %v315_v52  ;;  %v4710_v9 = vunpack.c.h.bf16 %v2644_v47  ;;  %v3106_v42 = vld [vmem:[%s4601_s1 + $0x190] sm:$0xff] }
  0x50   :  { %1636 = vmatpush1.bf16.msra.mxu1 %v4705_v61  ;;  %1764 = vmatpush1.bf16.msra.mxu0 %v4706_v27  ;;  %v3069_v29 = vmul.f32 %v2990_v19, %v4707_v44  ;;  %v4711_v10 = vunpack.c.l.bf16 %v2629_v30  ;;  %v4712_v61 = vunpack.c.l.bf16 %v2644_v47  ;;  %v4713_v52 = vpack.c.bf16 %v2511_v18, %v2506_v17  ;;  %v4714_v30 = vld [vmem:[#allocation5_spill] sm:$0xff] }
  0x51   :  { %v3074_v57 = vmul.f32 %v2995_v53, %v4708_v55  ;;  %v3079_v26 = vmul.f32 %v2980_v34, %v4709_v49  ;;  %v3090_v62 = vmul.f32 %v2985_v40, %v4710_v9  ;;  %v4715_v55 = vpack.c.bf16 %v2557_v37, %v4714_v30 }
  0x52   :  { %v3095_v1 = vmul.f32 %v2990_v19, %v4711_v10  ;;  %v3100_v27 = vmul.f32 %v2995_v53, %v4712_v61  ;;  %1638 = vmatprep.subr.bf16.mxu1 %v4713_v52  ;;  %v4716_v47 = vunpack.c.h.bf16 %v2674_v23  ;;  %v4717_v9 = vunpack.c.h.bf16 %v2684_v24  ;;  %834 = vmatmul.mubr.f32.gmra.mrb[2].mxu1 %v310_v35  ;;  %v4723_v35 = vld [vmem:[#allocation3_spill] sm:$0xff] }
  0x53   :  { %1766 = vmatprep.subr.bf16.mxu0 %v4715_v55  ;;  %v4718_v61 = vunpack.c.l.bf16 %v2674_v23  ;;  %1204 = vmatmul.mubr.f32.gmra.mrb[2].mxu0 %v314_v54  ;;  %v4719_v18 = vunpack.c.l.bf16 %v2684_v24  ;;  %v4720_v52 = vunpack.c.h.bf16 %v2753_v13  ;;  %v4721_v55 = vunpack.c.h.bf16 %v2758_v48 }
  0x54   :  { %v3117_v49 = vmul.f32 %v2980_v34, %v4716_v47  ;;  %v3122_v10 = vmul.f32 %v2985_v40, %v4717_v9  ;;  %v4722_v9 = vld [vmem:[#allocation4_spill] sm:$0xff]  ;;  %839 = vmatprep.mubr.f32.mxu1 %v319_v50  ;;  %v4725_v24 = vunpack.c.l.bf16 %v2753_v13  ;;  %v3173_v50 = vld [vmem:[%s4601_s1 + $0x1a0] sm:$0xff]  ;;  %1209 = vmatprep.mubr.f32.mxu0 %v323_v11  ;;  %v4733_v13 = vunpack.c.l.bf16 %v2808_v43  ;;  %v3196_v11 = vld [vmem:[%s4599_s2 + $0x318] sm:$0xff] }
  0x55   :  { %v3127_v44 = vmul.f32 %v2990_v19, %v4718_v61  ;;  %v3133_v37 = vmul.f32 %v2995_v53, %v4719_v18  ;;  %v3138_v30 = vmul.f32 %v2980_v34, %v4720_v52  ;;  %v3143_v23 = vmul.f32 %v2985_v40, %v4721_v55 }
  0x56   :  { %v4724_v54 = vpack.c.bf16 %v4722_v9, %v4723_v35  ;;  %v3152_v61 = vmul.f32 %v2990_v19, %v4725_v24  ;;  %v4726_v18 = vunpack.c.l.bf16 %v2758_v48  ;;  %v4727_v55 = vunpack.c.h.bf16 %v2803_v28  ;;  %v3167_v9 = vld [vmem:[%s4599_s2 + $0x308] sm:$0xff]  ;;  %v4729_v35 = vld [vmem:[#allocation6_spill] sm:$0xff]  ;;  %840 = vmatmul.mubr.f32.gmra.mrb[4].mxu1 %v318_v15 }
  0x57   :  { %v4728_v48 = vld [vmem:[#allocation7_spill] sm:$0xff]  ;;  %v4731_v24 = vunpack.c.h.bf16 %v2808_v43  ;;  %v3191_v7 = vmul.f32 %v2995_v53, %v4733_v13  ;;  %v4735_v43 = vpack.c.bf16 %v2582_v58, %v2577_v31  ;;  %v4736_v13 = vpack.c.bf16 %v2619_v3, %v2614_v2  ;;  %v3233_v58 = vld [vmem:[%s4599_s2 + $0x6d8] sm:$0xff]  ;;  %v3238_v31 = vld [vmem:[%s4599_s2 + $0x300] sm:$0xff]  ;;  %1210 = vmatmul.mubr.f32.gmra.mrb[4].mxu0 %v322_v16  ;;  %845 = vmatprep.mubr.f32.mxu1 %v3052_v41 }
  0x58   :  { %1640 = vmatpush1.bf16.msra.mxu1 %v4724_v54  ;;  %v3157_v52 = vmul.f32 %v2995_v53, %v4726_v18  ;;  %v3162_v17 = vmul.f32 %v2980_v34, %v4727_v55  ;;  %v4730_v54 = vpack.c.bf16 %v4728_v48, %v4729_v35  ;;  %v4732_v55 = vunpack.c.l.bf16 %v2803_v28  ;;  %v3201_v48 = vld [vmem:[%s4599_s2 + $0x6c8] sm:$0xff]  ;;  %v3207_v35 = vld [vmem:[%s4601_s1 + $0x1b0] sm:$0xff]  ;;  %v3264_v15 = vld [vmem:[%s4599_s2 + $0x6c0] sm:$0xff]  ;;  %1215 = vmatprep.mubr.f32.mxu0 %v3057_v6 }
  0x59   :  { %v3181_v18 = vmul.f32 %v2985_v40, %v4731_v24  ;;  %4734 = vst [vmem:[#allocation5_spill] sm:$0xff] %v3191_v7  ;;  %1642 = vmatprep.subr.bf16.mxu1 %v4735_v43  ;;  %v4739_v59 = vunpack.c.l.bf16 %v2858_v45  ;;  %v3243_v2 = vld [vmem:[%s4599_s2 + $0x310] sm:$0xff]  ;;  %v4742_v43 = vunpack.c.h.bf16 %v2909_v60  ;;  %v3274_v16 = vld [vmem:[%s4599_s2 + $0x328] sm:$0xff] }
  0x5a   :  { %1768 = vmatpush1.bf16.msra.mxu0 %v4730_v54  ;;  %v3186_v47 = vmul.f32 %v2990_v19, %v4732_v55  ;;  %v4737_v54 = vunpack.c.h.bf16 %v2858_v45  ;;  %v4738_v55 = vunpack.c.h.bf16 %v2881_v51  ;;  %v4740_v45 = vunpack.c.l.bf16 %v2881_v51  ;;  %v3269_v51 = vld [vmem:[%s4599_s2 + $0x6d0] sm:$0xff]  ;;  %4746 = vst [vmem:[#allocation6_spill] sm:$0xff] %v3274_v16  ;;  %v3331_v6 = vld [vmem:[%s4599_s2 + $0x6e8] sm:$0xff]  ;;  %846 = vmatmul.mubr.f32.gmra.mrb[6].mxu1 %v3069_v29 }
  0x5b   :  { %1770 = vmatprep.subr.bf16.mxu0 %v4736_v13  ;;  %v3228_v7 = vmul.f32 %v2990_v19, %v4739_v59  ;;  %v3254_v13 = vmul.f32 %v2980_v34, %v4742_v43  ;;  %v4747_v43 = vpack.c.bf16 %v2597_v63, %v2592_v0  ;;  %v3299_v63 = vld [vmem:[%s4599_s2 + $0x338] sm:$0xff]  ;;  %v3304_v0 = vld [vmem:[%s4599_s2 + $0x320] sm:$0xff]  ;;  %v4756_v41 = vld [vmem:[#allocation8_spill] sm:$0xff]  ;;  %1216 = vmatmul.mubr.f32.gmra.mrb[6].mxu0 %v3074_v57  ;;  %v4787_v16 = vunpack.c.l.bf16 %v3106_v42 }
  0x5c   :  { %v3218_v24 = vmul.f32 %v2980_v34, %v4737_v54  ;;  %v3223_v28 = vmul.f32 %v2985_v40, %v4738_v55  ;;  %v3249_v59 = vmul.f32 %v2995_v53, %v4740_v45  ;;  %v4744_v54 = vunpack.c.h.bf16 %v2932_v5  ;;  %4754 = vst [vmem:[#allocation36_spill] sm:$0xff] %v3304_v0  ;;  %v3393_v29 = vld [vmem:[%s4599_s2 + $0x348] sm:$0xff]  ;;  %v3398_v57 = vld [vmem:[%s4599_s2 + $0x358] sm:$0xff]  ;;  %851 = vmatprep.mubr.f32.mxu1 %v3079_v26 }
  0x5d   :  { %4743 = vst [vmem:[#allocation3_spill] sm:$0xff] %v3254_v13  ;;  %1644 = vmatpush1.bf16.msra.mxu1 %v4747_v43  ;;  %1221 = vmatprep.mubr.f32.mxu0 %v3090_v62  ;;  %v3425_v26 = vld [vmem:[%s4599_s2 + $0x708] sm:$0xff] }
  0x5e   :  { %4741 = vst [vmem:[#allocation4_spill] sm:$0xff] %v3249_v59  ;;  %v3259_v55 = vmul.f32 %v2985_v40, %v4744_v54  ;;  %v4748_v54 = vunpack.c.l.bf16 %v2909_v60  ;;  %v4752_v59 = vunpack.c.h.bf16 %v2970_v14  ;;  %v3309_v60 = vld [vmem:[%s4599_s2 + $0x330] sm:$0xff]  ;;  %852 = vmatmul.mubr.f32.gmra.mrb[8].mxu1 %v3095_v1 }
  0x5f   :  { %4755 = vst [vmem:[#allocation37_spill] sm:$0xff] %v3309_v60  ;;  %v4779_v60 = vunpack.c.h.bf16 %v3106_v42  ;;  %1222 = vmatmul.mubr.f32.gmra.mrb[8].mxu0 %v3100_v27  ;;  %v4789_v42 = vunpack.c.h.bf16 %v3173_v50  ;;  %v3516_v1 = vld [vmem:[%s4599_s2 + $0x370] sm:$0xff]  ;;  %857 = vmatprep.mubr.f32.mxu1 %v3117_v49  ;;  %v3545_v49 = vld [vmem:[%s4599_s2 + $0x728] sm:$0xff] }
  0x60   :  { %4745 = vst [vmem:[#allocation7_spill] sm:$0xff] %v3259_v55  ;;  %v3284_v3 = vmul.f32 %v2990_v19, %v4748_v54  ;;  %v4750_v55 = vunpack.c.l.bf16 %v2932_v5  ;;  %v3294_v45 = vmul.f32 %v2980_v34, %v4752_v59  ;;  %v4757_v59 = vpack.c.bf16 %v2639_v4, %v4756_v41  ;;  %v3336_v4 = vld [vmem:[%s4599_s2 + $0x6f8] sm:$0xff]  ;;  %1227 = vmatprep.mubr.f32.mxu0 %v3122_v10 }
  0x61   :  { %v4760_v54 = vunpack.c.l.bf16 %v2970_v14  ;;  %v205_v41 = vunpack.c.l.bf16 %v3173_v50  ;;  %v3342_v14 = vld [vmem:[%s4601_s1 + $0x1c0] sm:$0xff]  ;;  %v3522_v50 = vld [vmem:[%s4599_s2 + $0x388] sm:$0xff]  ;;  %v3550_v10 = vld [vmem:[%s4599_s2 + $0x738] sm:$0xff] }
  0x62   :  { %4749 = vst [vmem:[#allocation33_spill] sm:$0xff] %v3284_v3  ;;  %v3289_v13 = vmul.f32 %v2995_v53, %v4750_v55  ;;  %4753 = vst [vmem:[#allocation35_spill] sm:$0xff] %v3294_v45  ;;  %1646 = vmatprep.subr.bf16.mxu1 %v4757_v59  ;;  %v4758_v55 = vunpack.c.h.bf16 %v2975_v56  ;;  %v4762_v59 = vpack.c.bf16 %v2659_v21, %v2654_v22  ;;  %v3366_v21 = vld [vmem:[%s4599_s2 + $0x6f0] sm:$0xff]  ;;  %v214_v62 = vunpack.c.h.bf16 %v3342_v14 }
  0x63   :  { %v3324_v45 = vmul.f32 %v2990_v19, %v4760_v54  ;;  %v3371_v22 = vld [vmem:[%s4601_s1 + $0x1d0] sm:$0xff]  ;;  %v3447_v3 = vmul.f32 %v2985_v40, %v4779_v60  ;;  %v81_v60 = vld [vmem:[%s4601_s1 + $0x1e0] sm:$0xff]  ;;  %4791 = vst [vmem:[#allocation49_spill] sm:$0xff] %v3522_v50  ;;  %858 = vmatmul.mubr.f32.gmra.mrb[10].mxu1 %v3127_v44  ;;  %1228 = vmatmul.mubr.f32.gmra.mrb[10].mxu0 %v3133_v37  ;;  %v3623_v44 = vld [vmem:[%s4599_s2 + $0x3b8] sm:$0xff] }
  0x64   :  { %4751 = vst [vmem:[#allocation34_spill] sm:$0xff] %v3289_v13  ;;  %v3319_v43 = vmul.f32 %v2985_v40, %v4758_v55  ;;  %1772 = vmatpush1.bf16.msra.mxu0 %v4762_v59  ;;  %v4763_v55 = vunpack.c.l.bf16 %v2975_v56  ;;  %v4765_v56 = vunpack.c.h.bf16 %v3017_v46  ;;  %v217_v27 = vunpack.c.l.bf16 %v3371_v22  ;;  %v3628_v37 = vld [vmem:[%s4599_s2 + $0x3a0] sm:$0xff]  ;;  %863 = vmatprep.mubr.f32.mxu1 %v3138_v30  ;;  %v3693_v50 = vld [vmem:[%s4599_s2 + $0x750] sm:$0xff] }
  0x65   :  { %4761 = vst [vmem:[#allocation38_spill] sm:$0xff] %v3324_v45  ;;  %v4769_v45 = vunpack.c.l.bf16 %v3017_v46  ;;  %v209_v46 = vunpack.c.l.bf16 %v3207_v35  ;;  %1233 = vmatprep.mubr.f32.mxu0 %v3143_v23  ;;  %v89_v30 = vld [vmem:[%s4601_s1 + $0x220] sm:$0xff]  ;;  %v91_v23 = vld [vmem:[%s4601_s1 + $0x230] sm:$0xff] }
  0x66   :  { %4759 = vst [vmem:[#allocation8_spill] sm:$0xff] %v3319_v43  ;;  %v3350_v54 = vmul.f32 %v2995_v53, %v4763_v55  ;;  %v3361_v43 = vld [vmem:[%s4599_s2 + $0x6e0] sm:$0xff]  ;;  %v3378_v59 = vmul.f32 %v2980_v34, %v4765_v56  ;;  %v4767_v55 = vunpack.c.h.bf16 %v3034_v36 }
  0x67   :  { %v3388_v13 = vmul.f32 %v2990_v19, %v4769_v45  ;;  %v3403_v56 = vld [vmem:[%s4599_s2 + $0x340] sm:$0xff]  ;;  %v4771_v45 = vunpack.c.l.bf16 %v3034_v36  ;;  %v3430_v36 = vld [vmem:[%s4599_s2 + $0x718] sm:$0xff]  ;;  %864 = vmatmul.mubr.f32.gmra.mrb[12].mxu1 %v3152_v61  ;;  %1234 = vmatmul.mubr.f32.gmra.mrb[12].mxu0 %v3157_v52  ;;  %v3725_v52 = vld [vmem:[%s4599_s2 + $0x3d0] sm:$0xff] }
  0x68   :  { %4764 = vst [vmem:[#allocation39_spill] sm:$0xff] %v3350_v54  ;;  %4766 = vst [vmem:[#allocation40_spill] sm:$0xff] %v3378_v59  ;;  %v3383_v5 = vmul.f32 %v2985_v40, %v4767_v55  ;;  %v3420_v59 = vld [vmem:[%s4599_s2 + $0x350] sm:$0xff]  ;;  %v4777_v54 = vunpack.c.h.bf16 %v3085_v8  ;;  %v3720_v61 = vld [vmem:[%s4599_s2 + $0x3c0] sm:$0xff]  ;;  %869 = vmatprep.mubr.f32.mxu1 %v3162_v17  ;;  %1239 = vmatprep.mubr.f32.mxu0 %v3181_v18  ;;  %v4837_v17 = vpack.c.bf16 %v3233_v58, %v3201_v48 }
  0x69   :  { %4770 = vst [vmem:[#allocation42_spill] sm:$0xff] %v3388_v13  ;;  %v3411_v55 = vmul.f32 %v2995_v53, %v4771_v45  ;;  %v4773_v45 = vld [vmem:[#allocation10_spill] sm:$0xff]  ;;  %v4774_v13 = vld [vmem:[#allocation9_spill] sm:$0xff]  ;;  %v4839_v58 = vld [vmem:[#allocation27_spill] sm:$0xff] }
  0x6a   :  { %4768 = vst [vmem:[#allocation41_spill] sm:$0xff] %v3383_v5  ;;  %v4775_v5 = vpack.c.bf16 %v4773_v45, %v4774_v13  ;;  %v3442_v0 = vmul.f32 %v2980_v34, %v4777_v54  ;;  %4780 = vst [vmem:[#allocation9_spill] sm:$0xff] %v3447_v3  ;;  %v3454_v13 = vld [vmem:[%s4599_s2 + $0x368] sm:$0xff]  ;;  %v4784_v54 = vpack.c.bf16 %v2743_v39, %v2738_v20  ;;  %v3491_v20 = vld [vmem:[%s4599_s2 + $0x710] sm:$0xff] }
  0x6b   :  { %4772 = vst [vmem:[#allocation43_spill] sm:$0xff] %v3411_v55  ;;  %v4776_v55 = vpack.c.bf16 %v2716_v33, %v2711_v32  ;;  %4781 = vst [vmem:[#allocation44_spill] sm:$0xff] %v3454_v13  ;;  %v3459_v32 = vld [vmem:[%s4599_s2 + $0x378] sm:$0xff]  ;;  %v218_v33 = vunpack.c.h.bf16 %v3371_v22  ;;  %v3479_v3 = vmul.f32 %v2995_v53, %v4787_v16  ;;  %v83_v39 = vld [vmem:[%s4601_s1 + $0x1f0] sm:$0xff]  ;;  %v3504_v16 = vmul.f32 %v2980_v34, %v4789_v42 }
  0x6c   :  { %1648 = vmatpush1.bf16.msra.mxu1 %v4775_v5  ;;  %4778 = vst [vmem:[#allocation10_spill] sm:$0xff] %v3442_v0  ;;  %4782 = vst [vmem:[#allocation45_spill] sm:$0xff] %v3459_v32  ;;  %v4783_v5 = vpack.c.bf16 %v2694_v12, %v2689_v25  ;;  %v3486_v25 = vld [vmem:[%s4599_s2 + $0x700] sm:$0xff]  ;;  %v213_v12 = vunpack.c.l.bf16 %v3342_v14  ;;  %v3532_v42 = vmul.f32 %v2990_v19, %v205_v41  ;;  %v222_v22 = vunpack.c.h.bf16 %v81_v60 }
  0x6d   :  { %1774 = vmatprep.subr.bf16.mxu0 %v4776_v55  ;;  %v4785_v55 = vunpack.c.l.bf16 %v3085_v8  ;;  %4788 = vst [vmem:[#allocation47_spill] sm:$0xff] %v3479_v3  ;;  %4790 = vst [vmem:[#allocation48_spill] sm:$0xff] %v3504_v16  ;;  %v3511_v14 = vld [vmem:[%s4599_s2 + $0x360] sm:$0xff]  ;;  %v3540_v8 = vld [vmem:[%s4599_s2 + $0x398] sm:$0xff]  ;;  %v226_v16 = vunpack.c.h.bf16 %v83_v39  ;;  %v221_v13 = vunpack.c.l.bf16 %v81_v60  ;;  %870 = vmatmul.mubr.f32.gmra.mrb[14].mxu1 %v3186_v47 }
  0x6e   :  { %1650 = vmatprep.subr.bf16.mxu1 %v4783_v5  ;;  %1776 = vmatpush1.bf16.msra.mxu0 %v4784_v54  ;;  %v4792_v54 = vunpack.c.h.bf16 %v3207_v35  ;;  %4794 = vst [vmem:[#allocation51_spill] sm:$0xff] %v3532_v42  ;;  %v3535_v5 = vmul.f32 %v2995_v53, %v209_v46  ;;  %v4796_v35 = vld [vmem:[#allocation11_spill] sm:$0xff]  ;;  %v4798_v46 = vld [vmem:[#allocation17_spill] sm:$0xff]  ;;  %v3561_v42 = vmul.f32 %v2980_v34, %v214_v62  ;;  %v3568_v3 = vld [vmem:[%s4599_s2 + $0x380] sm:$0xff] }
  0x6f   :  { %v3474_v45 = vmul.f32 %v2990_v19, %v4785_v55  ;;  %v4797_v41 = vpack.c.bf16 %v2733_v38, %v4796_v35  ;;  %4802 = vst [vmem:[#allocation17_spill] sm:$0xff] %v3568_v3  ;;  %v3573_v38 = vld [vmem:[%s4599_s2 + $0x390] sm:$0xff]  ;;  %v4804_v62 = vld [vmem:[#allocation13_spill] sm:$0xff]  ;;  %v3595_v32 = vld [vmem:[%s4599_s2 + $0x720] sm:$0xff]  ;;  %875 = vmatprep.mubr.f32.mxu1 %v3218_v24 }
  0x70   :  { %v3529_v55 = vmul.f32 %v2985_v40, %v4792_v54  ;;  %4795 = vst [vmem:[#allocation52_spill] sm:$0xff] %v3535_v5  ;;  %v4799_v54 = vld [vmem:[#allocation16_spill] sm:$0xff]  ;;  %4801 = vst [vmem:[#allocation11_spill] sm:$0xff] %v3561_v42  ;;  %v3585_v5 = vmul.f32 %v2985_v40, %v218_v33  ;;  %v4819_v42 = vld [vmem:[#allocation25_spill] sm:$0xff] }
  0x71   :  { %4786 = vst [vmem:[#allocation46_spill] sm:$0xff] %v3474_v45  ;;  %1652 = vmatpush1.bf16.msra.mxu1 %v4797_v41  ;;  %v4800_v0 = vpack.c.bf16 %v4798_v46, %v4799_v54  ;;  %4803 = vst [vmem:[#allocation16_spill] sm:$0xff] %v3573_v38  ;;  %v4805_v35 = vld [vmem:[#allocation12_spill] sm:$0xff]  ;;  %v4807_v46 = vld [vmem:[#allocation19_spill] sm:$0xff]  ;;  %v3590_v45 = vmul.f32 %v2990_v19, %v213_v12  ;;  %v3610_v12 = vmul.f32 %v2995_v53, %v217_v27 }
  0x72   :  { %4793 = vst [vmem:[#allocation50_spill] sm:$0xff] %v3529_v55  ;;  %v4806_v41 = vpack.c.bf16 %v4804_v62, %v4805_v35  ;;  %v4808_v54 = vld [vmem:[#allocation18_spill] sm:$0xff]  ;;  %4810 = vst [vmem:[#allocation13_spill] sm:$0xff] %v3585_v5  ;;  %v3600_v62 = vld [vmem:[%s4599_s2 + $0x730] sm:$0xff]  ;;  %v225_v35 = vunpack.c.l.bf16 %v83_v39  ;;  %v3633_v39 = vmul.f32 %v2985_v40, %v226_v16  ;;  %v3636_v27 = vmul.f32 %v2990_v19, %v221_v13 }
  0x73   :  { %1778 = vmatprep.subr.bf16.mxu0 %v4800_v0  ;;  %v85_v0 = vld [vmem:[%s4601_s1 + $0x200] sm:$0xff]  ;;  %v4809_v55 = vpack.c.bf16 %v4807_v46, %v4808_v54  ;;  %4811 = vst [vmem:[#allocation12_spill] sm:$0xff] %v3590_v45  ;;  %v87_v33 = vld [vmem:[%s4601_s1 + $0x210] sm:$0xff]  ;;  %4812 = vst [vmem:[#allocation19_spill] sm:$0xff] %v3610_v12  ;;  %876 = vmatmul.mubr.f32.gmra.mrb[16].mxu1 %v3228_v7 }
  0x74   :  { %1654 = vmatprep.subr.bf16.mxu1 %v4806_v41  ;;  %v3618_v41 = vld [vmem:[%s4599_s2 + $0x3a8] sm:$0xff]  ;;  %4814 = vst [vmem:[#allocation53_spill] sm:$0xff] %v3633_v39  ;;  %4815 = vst [vmem:[#allocation54_spill] sm:$0xff] %v3636_v27  ;;  %v230_v46 = vunpack.c.h.bf16 %v85_v0  ;;  %v3643_v54 = vld [vmem:[%s4599_s2 + $0x3b0] sm:$0xff]  ;;  %v3658_v39 = vmul.f32 %v2995_v53, %v225_v35  ;;  %v234_v45 = vunpack.c.h.bf16 %v87_v33  ;;  %v229_v3 = vunpack.c.l.bf16 %v85_v0 }
  0x75   :  { %1780 = vmatpush1.bf16.msra.mxu0 %v4809_v55  ;;  %v3613_v55 = vmul.f32 %v2980_v34, %v222_v22  ;;  %v4816_v16 = vld [vmem:[#allocation15_spill] sm:$0xff]  ;;  %v4817_v13 = vld [vmem:[#allocation14_spill] sm:$0xff]  ;;  %v4820_v22 = vld [vmem:[#allocation24_spill] sm:$0xff]  ;;  %v233_v38 = vunpack.c.l.bf16 %v87_v33 }
  0x76   :  { %v4818_v60 = vpack.c.bf16 %v4816_v16, %v4817_v13  ;;  %v4821_v27 = vpack.c.bf16 %v4819_v42, %v4820_v22  ;;  %4822 = vst [vmem:[#allocation15_spill] sm:$0xff] %v3658_v39  ;;  %v3667_v5 = vld [vmem:[%s4599_s2 + $0x748] sm:$0xff]  ;;  %v3672_v42 = vld [vmem:[%s4599_s2 + $0x758] sm:$0xff]  ;;  %v4827_v13 = vld [vmem:[#allocation28_spill] sm:$0xff]  ;;  %v3688_v39 = vmul.f32 %v2980_v34, %v230_v46  ;;  %v3708_v0 = vmul.f32 %v2985_v40, %v234_v45 }
  0x77   :  { %4813 = vst [vmem:[#allocation18_spill] sm:$0xff] %v3613_v55  ;;  %v4823_v35 = vld [vmem:[#allocation21_spill] sm:$0xff]  ;;  %4831 = vst [vmem:[#allocation24_spill] sm:$0xff] %v3720_v61  ;;  %v3730_v45 = vmul.f32 %v2990_v19, %v229_v3  ;;  %v95_v33 = vld [vmem:[%s4601_s1 + $0x250] sm:$0xff]  ;;  %v237_v3 = vunpack.c.l.bf16 %v89_v30  ;;  %v4852_v61 = vpack.c.bf16 %v3196_v11, %v3167_v9 }
  0x78   :  { %1656 = vmatpush1.bf16.msra.mxu1 %v4818_v60  ;;  %1782 = vmatprep.subr.bf16.mxu0 %v4821_v27  ;;  %v3677_v60 = vld [vmem:[%s4599_s2 + $0x740] sm:$0xff]  ;;  %v4824_v27 = vld [vmem:[#allocation20_spill] sm:$0xff]  ;;  %v4826_v16 = vld [vmem:[#allocation29_spill] sm:$0xff]  ;;  %4829 = vst [vmem:[#allocation14_spill] sm:$0xff] %v3688_v39 }
  0x79   :  { %v4825_v22 = vpack.c.bf16 %v4823_v35, %v4824_v27  ;;  %v4828_v12 = vpack.c.bf16 %v4826_v16, %v4827_v13  ;;  %v3698_v35 = vld [vmem:[%s4599_s2 + $0x3c8] sm:$0xff]  ;;  %4830 = vst [vmem:[#allocation25_spill] sm:$0xff] %v3708_v0  ;;  %v238_v27 = vunpack.c.h.bf16 %v89_v30  ;;  %4832 = vst [vmem:[#allocation21_spill] sm:$0xff] %v3730_v45  ;;  %v3733_v16 = vmul.f32 %v2995_v53, %v233_v38  ;;  %v4835_v0 = vld [vmem:[#allocation22_spill] sm:$0xff] }
  0x7a   :  { %v242_v13 = vunpack.c.h.bf16 %v91_v23  ;;  %v4834_v55 = vld [vmem:[#allocation23_spill] sm:$0xff]  ;;  %v241_v38 = vunpack.c.l.bf16 %v91_v23  ;;  %v97_v48 = vld [vmem:[%s4601_s1 + $0x260] sm:$0xff]  ;;  %v4842_v23 = vpack.c.bf16 %v3269_v51, %v3264_v15  ;;  %v3785_v15 = vld [vmem:[%s4599_s2 + $0x3f8] sm:$0xff] }
  0x7b   :  { %1658 = vmatprep.subr.bf16.mxu1 %v4825_v22  ;;  %1784 = vmatpush1.bf16.msra.mxu0 %v4828_v12  ;;  %v3703_v12 = vld [vmem:[%s4599_s2 + $0x3d8] sm:$0xff]  ;;  %v93_v22 = vld [vmem:[%s4601_s1 + $0x240] sm:$0xff]  ;;  %4833 = vst [vmem:[#allocation20_spill] sm:$0xff] %v3733_v16  ;;  %v4836_v39 = vpack.c.bf16 %v4834_v55, %v4835_v0  ;;  %v3747_v18 = vmul.f32 %v2980_v34, %v238_v27  ;;  %v3754_v16 = vld [vmem:[%s4599_s2 + $0x768] sm:$0xff] }
  0x7c   :  { %1786 = vmatprep.subr.bf16.mxu0 %v4837_v17  ;;  %v3759_v55 = vld [vmem:[%s4599_s2 + $0x778] sm:$0xff]  ;;  %v3771_v0 = vmul.f32 %v2985_v40, %v242_v13  ;;  %v246_v17 = vunpack.c.h.bf16 %v93_v22  ;;  %v99_v51 = vld [vmem:[%s4601_s1 + $0x270] sm:$0xff]  ;;  %v3801_v46 = vld [vmem:[%s4599_s2 + $0x760] sm:$0xff] }
  0x7d   :  { %1660 = vmatpush1.bf16.msra.mxu1 %v4836_v39  ;;  %4838 = vst [vmem:[#allocation29_spill] sm:$0xff] %v3747_v18  ;;  %v4840_v39 = vld [vmem:[#allocation26_spill] sm:$0xff]  ;;  %v3780_v18 = vld [vmem:[%s4599_s2 + $0x3e8] sm:$0xff]  ;;  %v4844_v13 = vld [vmem:[#allocation5_spill] sm:$0xff]  ;;  %v258_v45 = vunpack.c.h.bf16 %v99_v51 }
  0x7e   :  { %v4841_v30 = vpack.c.bf16 %v4839_v58, %v4840_v39  ;;  %4843 = vst [vmem:[#allocation28_spill] sm:$0xff] %v3771_v0  ;;  %1240 = vmatmul.mubr.f32.gmra.mrb[14].mxu0 %v4844_v13  ;;  %v3793_v58 = vmul.f32 %v2990_v19, %v237_v3  ;;  %v3796_v39 = vmul.f32 %v2995_v53, %v241_v38  ;;  %v3806_v27 = vld [vmem:[%s4599_s2 + $0x770] sm:$0xff]  ;;  %v249_v3 = vunpack.c.l.bf16 %v95_v33  ;;  %v3818_v13 = vld [vmem:[%s4599_s2 + $0x3e0] sm:$0xff] }
  0x7f   :  { %1788 = vmatpush1.bf16.msra.mxu0 %v4842_v23  ;;  %v245_v23 = vunpack.c.l.bf16 %v93_v22  ;;  %1245 = vmatprep.mubr.f32.mxu0 %v3223_v28  ;;  %v3811_v47 = vmul.f32 %v2980_v34, %v246_v17  ;;  %v254_v38 = vunpack.c.h.bf16 %v97_v48  ;;  %v22_v28 = vld [vmem:[%s4601_s1 + $0x8] sm:$0xff]  ;;  %v4848_v24 = vld [vmem:[#allocation32_spill] sm:$0xff]  ;;  %v4851_v22 = vpack.c.bf16 %v3336_v4, %v3331_v6 }
  0x80   :  { %1662 = vmatprep.subr.bf16.mxu1 %v4841_v30  ;;  %4845 = vst [vmem:[#allocation23_spill] sm:$0xff] %v3793_v58  ;;  %4846 = vst [vmem:[#allocation22_spill] sm:$0xff] %v3796_v39  ;;  %v250_v30 = vunpack.c.h.bf16 %v95_v33  ;;  %v3823_v39 = vld [vmem:[%s4599_s2 + $0x3f0] sm:$0xff]  ;;  %v4849_v33 = vld [vmem:[#allocation30_spill] sm:$0xff]  ;;  %v3849_v6 = vmul.f32 %v2995_v53, %v249_v3  ;;  %v3862_v11 = vmul.f32 %v2985_v40, %v258_v45 }
  0x81   :  { %4847 = vst [vmem:[#allocation27_spill] sm:$0xff] %v3811_v47  ;;  %v4850_v17 = vpack.c.bf16 %v4848_v24, %v4849_v33  ;;  %1790 = vmatprep.subr.bf16.mxu0 %v4851_v22  ;;  %v3838_v58 = vmul.f32 %v2990_v19, %v245_v23  ;;  %v4853_v24 = vpack.c.bf16 %v3366_v21, %v3361_v43  ;;  %v253_v23 = vunpack.c.l.bf16 %v97_v48  ;;  %v24_v22 = vld [vmem:[%s4601_s1 + $0x18] sm:$0xff]  ;;  %v4854_v9 = vld [vmem:[#allocation4_spill] sm:$0xff]  ;;  %v4855_v48 = vld [vmem:[#allocation3_spill] sm:$0xff] }
  0x82   :  { %v3835_v47 = vmul.f32 %v2985_v40, %v250_v30  ;;  %v3852_v4 = vmul.f32 %v2980_v34, %v254_v38  ;;  %1246 = vmatmul.mubr.f32.gmra.mrb[16].mxu0 %v4854_v9  ;;  %v257_v34 = vunpack.c.l.bf16 %v99_v51  ;;  %v103_v21 = vunpack.c.l.bf16 %v22_v28  ;;  %881 = vmatprep.mubr.f32.mxu1 %v4855_v48  ;;  %v4856_v3 = vld [vmem:[#allocation7_spill] sm:$0xff]  ;;  %v4857_v33 = vld [vmem:[#allocation2_spill] sm:$0xff]  ;;  %v28_v9 = vld [vmem:[%s4601_s1 + $0x38] sm:$0xff] }
  0x83   :  { %1664 = vmatpush1.bf16.msra.mxu1 %v4850_v17  ;;  %1792 = vmatpush1.bf16.msra.mxu0 %v4853_v24  ;;  %v3872_v7 = vmul.f32 %v2990_v19, %v253_v23  ;;  %v104_v38 = vunpack.c.h.bf16 %v22_v28  ;;  %v4858_v40 = vsub.s32 2, %v4857_v33  ;;  %v4859_v45 = vld [vmem:[#allocation31_spill] sm:$0xff]  ;;  %v4860_v51 = vsub.s32 3, %v4857_v33 }
  0x84   :  { %1666 = vmatprep.subr.bf16.mxu1 %v4852_v61  ;;  %v26_v61 = vld [vmem:[%s4601_s1 + $0x28] sm:$0xff]  ;;  %1251 = vmatprep.mubr.f32.mxu0 %v4856_v3  ;;  %v4861_v48 = vpack.c.bf16 %v3243_v2, %v3238_v31  ;;  %v4862_v19 = vpack.c.bf16 %v3430_v36, %v3425_v26  ;;  %v3894_v28 = vmul.f32 %v2995_v53, %v257_v34  ;;  %v107_v23 = vunpack.c.l.bf16 %v24_v22  ;;  %v32_v31 = vld [vmem:[%s4601_s1 + $0x58] sm:$0xff]  ;;  %v4864_v2 = vld [vmem:[#allocation6_spill] sm:$0xff] }
  0x85   :  { %v3877_v17 = vrot.slane %v4859_v45, %v4858_v40  ;;  %v3882_v24 = vrot.slane %v4859_v45, %v4860_v51  ;;  %v108_v3 = vunpack.c.h.bf16 %v24_v22  ;;  %v4863_v40 = vsub.s32 7, %v4857_v33  ;;  %v30_v43 = vld [vmem:[%s4601_s1 + $0x48] sm:$0xff] }
  0x86   :  { %1794 = vmatprep.subr.bf16.mxu0 %v4862_v19  ;;  %v4865_v26 = vpack.c.bf16 %v3299_v63, %v4864_v2  ;;  %v4866_v53 = vpack.c.bf16 %v3491_v20, %v3486_v25  ;;  %v4867_v34 = vsub.s32 6, %v4857_v33  ;;  %v112_v19 = vunpack.c.h.bf16 %v26_v61  ;;  %v4869_v63 = vld [vmem:[#allocation34_spill] sm:$0xff]  ;;  %v4871_v33 = vld [vmem:[#allocation8_spill] sm:$0xff]  ;;  %v38_v30 = vld [vmem:[%s4601_s1 + $0x88] sm:$0xff] }
  0x87   :  { %1668 = vmatpush1.bf16.msra.mxu1 %v4861_v48  ;;  %v3899_v51 = vrot.slane %v4859_v45, %v4863_v40  ;;  %v3914_v36 = vmul.f32 %v3877_v17, %v103_v21  ;;  %v3917_v22 = vmul.f32 %v3882_v24, %v104_v38  ;;  %v4868_v40 = vld [vmem:[#allocation33_spill] sm:$0xff]  ;;  %1252 = vmatmul.mubr.f32.gmra.mrb[18].mxu0 %v4869_v63  ;;  %v116_v25 = vunpack.c.h.bf16 %v28_v9  ;;  %v34_v38 = vld [vmem:[%s4601_s1 + $0x68] sm:$0xff] }
  0x88   :  { %1670 = vmatprep.subr.bf16.mxu1 %v4865_v26  ;;  %1796 = vmatpush1.bf16.msra.mxu0 %v4866_v53  ;;  %v3922_v48 = vrot.slane %v4859_v45, %v4867_v34  ;;  %v111_v20 = vunpack.c.l.bf16 %v26_v61  ;;  %v115_v21 = vunpack.c.l.bf16 %v28_v9  ;;  %v4870_v26 = vld [vmem:[#allocation35_spill] sm:$0xff]  ;;  %v3938_v53 = vmul.f32 %v3882_v24, %v112_v19  ;;  %v36_v61 = vld [vmem:[%s4601_s1 + $0x78] sm:$0xff] }
  0x89   :  { %882 = vmatmul.mubr.f32.gmra.mrb[18].mxu1 %v4868_v40  ;;  %v3927_v2 = vmul.f32 %v3899_v51, %v108_v3  ;;  %1257 = vmatprep.mubr.f32.mxu0 %v4871_v33  ;;  %v120_v34 = vunpack.c.h.bf16 %v30_v43  ;;  %v124_v3 = vunpack.c.h.bf16 %v32_v31  ;;  %v4872_v9 = vld [vmem:[#allocation37_spill] sm:$0xff]  ;;  %v4873_v40 = vld [vmem:[#allocation36_spill] sm:$0xff]  ;;  %v119_v0 = vunpack.c.l.bf16 %v30_v43 }
  0x8a   :  { %887 = vmatprep.mubr.f32.mxu1 %v4870_v26  ;;  %v3935_v45 = vmul.f32 %v3922_v48, %v107_v23  ;;  %v4874_v63 = vpack.c.bf16 %v4872_v9, %v4873_v40  ;;  %v4875_v26 = vpack.c.bf16 %v3550_v10, %v3545_v49  ;;  %v3950_v23 = vmul.f32 %v3899_v51, %v116_v25  ;;  %v40_v9 = vld [vmem:[%s4601_s1 + $0x98] sm:$0xff]  ;;  %v4878_v40 = vld [vmem:[#allocation38_spill] sm:$0xff] }
  0x8b   :  { %v3953_v19 = vmul.f32 %v3877_v17, %v111_v20  ;;  %v3956_v33 = vmul.f32 %v3922_v48, %v115_v21  ;;  %v4876_v49 = vpack.c.bf16 %v3398_v57, %v3393_v29  ;;  %v4877_v10 = vpack.c.bf16 %v3600_v62, %v3595_v32  ;;  %v42_v32 = vld [vmem:[%s4601_s1 + $0xa8] sm:$0xff]  ;;  %v4880_v62 = vld [vmem:[#allocation40_spill] sm:$0xff] }
  0x8c   :  { %1672 = vmatpush1.bf16.msra.mxu1 %v4874_v63  ;;  %1798 = vmatprep.subr.bf16.mxu0 %v4875_v26  ;;  %v3971_v25 = vmul.f32 %v3882_v24, %v120_v34  ;;  %v3974_v43 = vmul.f32 %v3899_v51, %v124_v3  ;;  %v123_v20 = vunpack.c.l.bf16 %v32_v31  ;;  %v128_v21 = vunpack.c.h.bf16 %v34_v38  ;;  %v4879_v63 = vld [vmem:[#allocation39_spill] sm:$0xff]  ;;  %v4881_v34 = vld [vmem:[#allocation41_spill] sm:$0xff] }
  0x8d   :  { %1674 = vmatprep.subr.bf16.mxu1 %v4876_v49  ;;  %1800 = vmatpush1.bf16.msra.mxu0 %v4877_v10  ;;  %v3979_v26 = vmul.f32 %v3877_v17, %v119_v0  ;;  %v132_v29 = vunpack.c.h.bf16 %v36_v61  ;;  %v127_v57 = vunpack.c.l.bf16 %v34_v38  ;;  %v131_v49 = vunpack.c.l.bf16 %v36_v61  ;;  %v44_v38 = vld [vmem:[%s4601_s1 + $0xb8] sm:$0xff] }
  0x8e   :  { %888 = vmatmul.mubr.f32.gmra.mrb[20].mxu1 %v4878_v40  ;;  %1258 = vmatmul.mubr.f32.gmra.mrb[20].mxu0 %v4879_v63  ;;  %v3987_v31 = vmul.f32 %v3922_v48, %v123_v20  ;;  %v3990_v3 = vmul.f32 %v3882_v24, %v128_v21  ;;  %v136_v10 = vunpack.c.h.bf16 %v38_v30  ;;  %v140_v0 = vunpack.c.h.bf16 %v40_v9 }
  0x8f   :  { %893 = vmatprep.mubr.f32.mxu1 %v4880_v62  ;;  %1263 = vmatprep.mubr.f32.mxu0 %v4881_v34  ;;  %v4882_v61 = vpack.c.bf16 %v3420_v59, %v3403_v56  ;;  %v4883_v40 = vpack.c.bf16 %v3672_v42, %v3667_v5  ;;  %v4002_v20 = vmul.f32 %v3899_v51, %v132_v29  ;;  %v135_v62 = vunpack.c.l.bf16 %v38_v30  ;;  %v46_v34 = vld [vmem:[%s4601_s1 + $0xc8] sm:$0xff]  ;;  %v48_v59 = vld [vmem:[%s4601_s1 + $0xd8] sm:$0xff]  ;;  %v4887_v5 = vld [vmem:[#allocation44_spill] sm:$0xff] }
  0x90   :  { %v4005_v21 = vmul.f32 %v3877_v17, %v127_v57  ;;  %v4008_v63 = vmul.f32 %v3922_v48, %v131_v49  ;;  %v4886_v56 = vld [vmem:[#allocation45_spill] sm:$0xff]  ;;  %v4889_v29 = vpack.c.bf16 %v3693_v50, %v3677_v60  ;;  %v4023_v57 = vmul.f32 %v3882_v24, %v136_v10  ;;  %v50_v50 = vld [vmem:[%s4601_s1 + $0xe8] sm:$0xff]  ;;  %v4892_v60 = vld [vmem:[#allocation10_spill] sm:$0xff] }
  0x91   :  { %1676 = vmatpush1.bf16.msra.mxu1 %v4882_v61  ;;  %1802 = vmatprep.subr.bf16.mxu0 %v4883_v40  ;;  %v4888_v42 = vpack.c.bf16 %v4886_v56, %v4887_v5  ;;  %v4026_v30 = vmul.f32 %v3899_v51, %v140_v0  ;;  %v139_v49 = vunpack.c.l.bf16 %v40_v9  ;;  %v144_v61 = vunpack.c.h.bf16 %v42_v32  ;;  %v4890_v40 = vld [vmem:[#allocation42_spill] sm:$0xff]  ;;  %v4893_v10 = vld [vmem:[#allocation9_spill] sm:$0xff] }
  0x92   :  { %4884 = vst [vmem:[#allocation26_spill] sm:$0xff] %v4005_v21  ;;  %4885 = vst [vmem:[#allocation5_spill] sm:$0xff] %v4008_v63  ;;  %1804 = vmatpush1.bf16.msra.mxu0 %v4889_v29  ;;  %894 = vmatmul.mubr.f32.gmra.mrb[22].mxu1 %v4890_v40  ;;  %v4891_v63 = vld [vmem:[#allocation43_spill] sm:$0xff]  ;;  %v4031_v21 = vmul.f32 %v3877_v17, %v135_v62  ;;  %v148_v56 = vunpack.c.h.bf16 %v44_v38  ;;  %v143_v5 = vunpack.c.l.bf16 %v42_v32  ;;  %v156_v62 = vunpack.c.h.bf16 %v48_v59  ;;  %v52_v32 = vld [vmem:[%s4601_s1 + $0xf8] sm:$0xff] }
  0x93   :  { %1678 = vmatprep.subr.bf16.mxu1 %v4888_v42  ;;  %1264 = vmatmul.mubr.f32.gmra.mrb[22].mxu0 %v4891_v63  ;;  %v147_v42 = vunpack.c.l.bf16 %v44_v38  ;;  %v4039_v9 = vmul.f32 %v3922_v48, %v139_v49  ;;  %v4042_v0 = vmul.f32 %v3882_v24, %v144_v61  ;;  %v152_v63 = vunpack.c.h.bf16 %v46_v34 }
  0x94   :  { %899 = vmatprep.mubr.f32.mxu1 %v4892_v60  ;;  %1269 = vmatprep.mubr.f32.mxu0 %v4893_v10  ;;  %v4894_v38 = vpack.c.bf16 %v3516_v1, %v3511_v14  ;;  %v4895_v29 = vpack.c.bf16 %v3759_v55, %v3754_v16  ;;  %v4054_v49 = vmul.f32 %v3899_v51, %v148_v56  ;;  %v151_v60 = vunpack.c.l.bf16 %v46_v34  ;;  %v54_v10 = vld [vmem:[%s4601_s1 + $0x108] sm:$0xff]  ;;  %v56_v14 = vld [vmem:[%s4601_s1 + $0x118] sm:$0xff] }
  0x95   :  { %v4057_v61 = vmul.f32 %v3877_v17, %v143_v5  ;;  %v4060_v40 = vmul.f32 %v3922_v48, %v147_v42  ;;  %v4897_v1 = vld [vmem:[#allocation49_spill] sm:$0xff]  ;;  %v4899_v55 = vpack.c.bf16 %v3806_v27, %v3801_v46  ;;  %v4075_v56 = vmul.f32 %v3882_v24, %v152_v63  ;;  %v58_v46 = vld [vmem:[%s4601_s1 + $0x128] sm:$0xff]  ;;  %v4903_v27 = vld [vmem:[#allocation48_spill] sm:$0xff] }
  0x96   :  { %1680 = vmatpush1.bf16.msra.mxu1 %v4894_v38  ;;  %1806 = vmatprep.subr.bf16.mxu0 %v4895_v29  ;;  %v4898_v16 = vpack.c.bf16 %v3540_v8, %v4897_v1  ;;  %v4078_v34 = vmul.f32 %v3899_v51, %v156_v62  ;;  %v155_v5 = vunpack.c.l.bf16 %v48_v59  ;;  %v160_v42 = vunpack.c.h.bf16 %v50_v50  ;;  %v4900_v38 = vld [vmem:[#allocation46_spill] sm:$0xff]  ;;  %v4901_v29 = vld [vmem:[#allocation47_spill] sm:$0xff] }
  0x97   :  { %4896 = vst [vmem:[#allocation32_spill] sm:$0xff] %v4060_v40  ;;  %1808 = vmatpush1.bf16.msra.mxu0 %v4899_v55  ;;  %900 = vmatmul.mubr.f32.gmra.mrb[24].mxu1 %v4900_v38  ;;  %v4083_v40 = vmul.f32 %v3877_v17, %v151_v60  ;;  %v164_v8 = vunpack.c.h.bf16 %v52_v32  ;;  %v159_v1 = vunpack.c.l.bf16 %v50_v50  ;;  %v4904_v63 = vld [vmem:[#allocation50_spill] sm:$0xff]  ;;  %v168_v55 = vunpack.c.h.bf16 %v54_v10  ;;  %v60_v50 = vld [vmem:[%s4601_s1 + $0x138] sm:$0xff] }
  0x98   :  { %1682 = vmatprep.subr.bf16.mxu1 %v4898_v16  ;;  %1270 = vmatmul.mubr.f32.gmra.mrb[24].mxu0 %v4901_v29  ;;  %v163_v16 = vunpack.c.l.bf16 %v52_v32  ;;  %v4091_v59 = vmul.f32 %v3922_v48, %v155_v5  ;;  %v4094_v62 = vmul.f32 %v3882_v24, %v160_v42  ;;  %v172_v60 = vunpack.c.h.bf16 %v56_v14  ;;  %v4907_v32 = vld [vmem:[#allocation16_spill] sm:$0xff]  ;;  %v4908_v38 = vld [vmem:[#allocation17_spill] sm:$0xff] }
  0x99   :  { %4902 = vst [vmem:[#allocation30_spill] sm:$0xff] %v4083_v40  ;;  %905 = vmatprep.mubr.f32.mxu1 %v4903_v27  ;;  %1275 = vmatprep.mubr.f32.mxu0 %v4904_v63  ;;  %v4909_v29 = vpack.c.bf16 %v4907_v32, %v4908_v38  ;;  %v4103_v27 = vmul.f32 %v3899_v51, %v164_v8  ;;  %v167_v42 = vunpack.c.l.bf16 %v54_v10  ;;  %v176_v10 = vunpack.c.h.bf16 %v58_v46  ;;  %v4914_v38 = vld [vmem:[#allocation51_spill] sm:$0xff] }
  0x9a   :  { %4905 = vst [vmem:[#allocation4_spill] sm:$0xff] %v4091_v59  ;;  %4906 = vst [vmem:[#allocation3_spill] sm:$0xff] %v4094_v62  ;;  %v4106_v63 = vmul.f32 %v3877_v17, %v159_v1  ;;  %v4109_v5 = vmul.f32 %v3922_v48, %v163_v16  ;;  %v62_v62 = vld [vmem:[%s4601_s1 + $0x148] sm:$0xff]  ;;  %v64_v59 = vld [vmem:[%s4601_s1 + $0x158] sm:$0xff]  ;;  %v4913_v32 = vpack.c.bf16 %v3623_v44, %v3618_v41  ;;  %v171_v16 = vunpack.c.l.bf16 %v56_v14 }
  0x9b   :  { %1684 = vmatpush1.bf16.msra.mxu1 %v4909_v29  ;;  %4910 = vst [vmem:[#allocation7_spill] sm:$0xff] %v4103_v27  ;;  %v4121_v8 = vmul.f32 %v3882_v24, %v168_v55  ;;  %v4124_v1 = vmul.f32 %v3899_v51, %v172_v60  ;;  %v4915_v29 = vld [vmem:[#allocation52_spill] sm:$0xff]  ;;  %v175_v27 = vunpack.c.l.bf16 %v58_v46  ;;  %v179_v40 = vunpack.c.l.bf16 %v60_v50  ;;  %v66_v41 = vld [vmem:[%s4601_s1 + $0x168] sm:$0xff]  ;;  %v4917_v55 = vld [vmem:[#allocation13_spill] sm:$0xff] }
  0x9c   :  { %4911 = vst [vmem:[#allocation2_spill] sm:$0xff] %v4106_v63  ;;  %4912 = vst [vmem:[#allocation31_spill] sm:$0xff] %v4109_v5  ;;  %1686 = vmatprep.subr.bf16.mxu1 %v4913_v32  ;;  %906 = vmatmul.mubr.f32.gmra.mrb[26].mxu1 %v4914_v38  ;;  %v4129_v5 = vmul.f32 %v3877_v17, %v167_v42  ;;  %v180_v63 = vunpack.c.h.bf16 %v60_v50  ;;  %v4916_v44 = vld [vmem:[#allocation11_spill] sm:$0xff]  ;;  %v4137_v14 = vmul.f32 %v3922_v48, %v171_v16  ;;  %v68_v46 = vld [vmem:[%s4601_s1 + $0x178] sm:$0xff] }
  0x9d   :  { %1276 = vmatmul.mubr.f32.gmra.mrb[26].mxu0 %v4915_v29  ;;  %911 = vmatprep.mubr.f32.mxu1 %v4916_v44  ;;  %v4140_v60 = vmul.f32 %v3882_v24, %v176_v10  ;;  %v184_v32 = vunpack.c.h.bf16 %v62_v62  ;;  %v188_v42 = vunpack.c.h.bf16 %v64_v59  ;;  %v4919_v50 = vpack.c.bf16 %v3643_v54, %v3628_v37  ;;  %v70_v44 = vld [vmem:[%s4601_s1 + $0x188] sm:$0xff] }
  0x9e   :  { %1281 = vmatprep.mubr.f32.mxu0 %v4917_v55  ;;  %v4149_v38 = vmul.f32 %v3899_v51, %v180_v63  ;;  %v4152_v29 = vmul.f32 %v3877_v17, %v175_v27  ;;  %v4155_v16 = vmul.f32 %v3922_v48, %v179_v40  ;;  %v183_v10 = vunpack.c.l.bf16 %v62_v62  ;;  %v72_v55 = vld [vmem:[%s4601_s1 + $0x198] sm:$0xff]  ;;  %v4924_v63 = vld [vmem:[#allocation12_spill] sm:$0xff] }
  0x9f   :  { %4918 = vst [vmem:[#allocation6_spill] sm:$0xff] %v4140_v60  ;;  %1688 = vmatpush1.bf16.msra.mxu1 %v4919_v50  ;;  %v4923_v37 = vpack.c.bf16 %v3703_v12, %v3698_v35  ;;  %v4167_v54 = vmul.f32 %v3882_v24, %v184_v32  ;;  %v4170_v27 = vmul.f32 %v3899_v51, %v188_v42  ;;  %v187_v40 = vunpack.c.l.bf16 %v64_v59  ;;  %v4925_v50 = vld [vmem:[#allocation19_spill] sm:$0xff]  ;;  %v4926_v12 = vld [vmem:[#allocation18_spill] sm:$0xff]  ;;  %v4927_v32 = vld [vmem:[#allocation53_spill] sm:$0xff] }
  0xa0   :  { %4920 = vst [vmem:[#allocation33_spill] sm:$0xff] %v4149_v38  ;;  %4921 = vst [vmem:[#allocation34_spill] sm:$0xff] %v4152_v29  ;;  %v192_v62 = vunpack.c.h.bf16 %v66_v41  ;;  %912 = vmatmul.mubr.f32.gmra.mrb[28].mxu1 %v4924_v63  ;;  %v196_v29 = vunpack.c.h.bf16 %v68_v46  ;;  %v191_v38 = vunpack.c.l.bf16 %v66_v41  ;;  %v195_v60 = vunpack.c.l.bf16 %v68_v46  ;;  %v74_v35 = vld [vmem:[%s4601_s1 + $0x1a8] sm:$0xff]  ;;  %v76_v41 = vld [vmem:[%s4601_s1 + $0x1b8] sm:$0xff] }
  0xa1   :  { %4922 = vst [vmem:[#allocation35_spill] sm:$0xff] %v4155_v16  ;;  %1690 = vmatprep.subr.bf16.mxu1 %v4923_v37  ;;  %1282 = vmatmul.mubr.f32.gmra.mrb[28].mxu0 %v4925_v50  ;;  %v4175_v16 = vmul.f32 %v3877_v17, %v183_v10  ;;  %v4183_v59 = vmul.f32 %v3922_v48, %v187_v40  ;;  %v200_v37 = vunpack.c.h.bf16 %v70_v44  ;;  %v204_v10 = vunpack.c.h.bf16 %v72_v55  ;;  %v4930_v46 = vld [vmem:[#allocation24_spill] sm:$0xff] }
  0xa2   :  { %917 = vmatprep.mubr.f32.mxu1 %v4926_v12  ;;  %1287 = vmatprep.mubr.f32.mxu0 %v4927_v32  ;;  %v4186_v42 = vmul.f32 %v3882_v24, %v192_v62  ;;  %v4931_v63 = vpack.c.bf16 %v3725_v52, %v4930_v46  ;;  %v4195_v50 = vmul.f32 %v3899_v51, %v196_v29  ;;  %v199_v62 = vunpack.c.l.bf16 %v70_v44  ;;  %v78_v32 = vld [vmem:[%s4601_s1 + $0x1c8] sm:$0xff]  ;;  %v4936_v46 = vld [vmem:[#allocation54_spill] sm:$0xff] }
  0xa3   :  { %4928 = vst [vmem:[#allocation8_spill] sm:$0xff] %v4183_v59  ;;  %v4198_v12 = vmul.f32 %v3877_v17, %v191_v38  ;;  %v4201_v40 = vmul.f32 %v3922_v48, %v195_v60  ;;  %v4935_v52 = vpack.c.bf16 %v3785_v15, %v3780_v18  ;;  %v4213_v29 = vmul.f32 %v3882_v24, %v200_v37  ;;  %v82_v18 = vld [vmem:[%s4601_s1 + $0x1e8] sm:$0xff]  ;;  %v4938_v15 = vld [vmem:[#allocation14_spill] sm:$0xff]  ;;  %v4939_v37 = vld [vmem:[#allocation25_spill] sm:$0xff] }
  0xa4   :  { %4929 = vst [vmem:[#allocation37_spill] sm:$0xff] %v4186_v42  ;;  %1692 = vmatpush1.bf16.msra.mxu1 %v4931_v63  ;;  %4932 = vst [vmem:[#allocation36_spill] sm:$0xff] %v4195_v50  ;;  %v80_v42 = vld [vmem:[%s4601_s1 + $0x1d8] sm:$0xff]  ;;  %v4216_v38 = vmul.f32 %v3899_v51, %v204_v10  ;;  %v203_v60 = vunpack.c.l.bf16 %v72_v55  ;;  %v208_v44 = vunpack.c.h.bf16 %v74_v35  ;;  %v4937_v63 = vld [vmem:[#allocation15_spill] sm:$0xff]  ;;  %v207_v50 = vunpack.c.l.bf16 %v74_v35 }
  0xa5   :  { %4933 = vst [vmem:[#allocation38_spill] sm:$0xff] %v4198_v12  ;;  %4934 = vst [vmem:[#allocation39_spill] sm:$0xff] %v4201_v40  ;;  %1694 = vmatprep.subr.bf16.mxu1 %v4935_v52  ;;  %918 = vmatmul.mubr.f32.gmra.mrb[30].mxu1 %v4936_v46  ;;  %v4221_v40 = vmul.f32 %v3877_v17, %v199_v62  ;;  %v212_v12 = vunpack.c.h.bf16 %v76_v41  ;;  %v211_v59 = vunpack.c.l.bf16 %v76_v41  ;;  %v216_v52 = vunpack.c.h.bf16 %v78_v32  ;;  %v84_v35 = vld [vmem:[%s4601_s1 + $0x1f8] sm:$0xff] }
  0xa6   :  { %1288 = vmatmul.mubr.f32.gmra.mrb[30].mxu0 %v4937_v63  ;;  %923 = vmatprep.mubr.f32.mxu1 %v4938_v15  ;;  %v4229_v55 = vmul.f32 %v3922_v48, %v203_v60  ;;  %v4232_v10 = vmul.f32 %v3882_v24, %v208_v44  ;;  %v220_v62 = vunpack.c.h.bf16 %v80_v42  ;;  %v4940_v41 = vpack.c.bf16 %v3823_v39, %v3818_v13  ;;  %v86_v15 = vld [vmem:[%s4601_s1 + $0x208] sm:$0xff] }
  0xa7   :  { %1293 = vmatprep.mubr.f32.mxu0 %v4939_v37  ;;  %v4241_v46 = vmul.f32 %v3899_v51, %v212_v12  ;;  %v4244_v63 = vmul.f32 %v3877_v17, %v207_v50  ;;  %v4247_v60 = vmul.f32 %v3922_v48, %v211_v59  ;;  %v215_v44 = vunpack.c.l.bf16 %v78_v32  ;;  %v88_v37 = vld [vmem:[%s4601_s1 + $0x218] sm:$0xff]  ;;  %v4947_v59 = vld [vmem:[#allocation20_spill] sm:$0xff] }
  0xa8   :  { %1696 = vmatpush1.bf16.msra.mxu1 %v4940_v41  ;;  %v4256_v39 = vmul.f32 %v3882_v24, %v216_v52  ;;  %v4259_v13 = vmul.f32 %v3899_v51, %v220_v62  ;;  %v219_v50 = vunpack.c.l.bf16 %v80_v42  ;;  %v224_v12 = vunpack.c.h.bf16 %v82_v18  ;;  %v4946_v41 = vld [vmem:[#allocation21_spill] sm:$0xff]  ;;  %v90_v52 = vld [vmem:[%s4601_s1 + $0x228] sm:$0xff]  ;;  %v4950_v62 = vld [vmem:[#allocation28_spill] sm:$0xff] }
  0xa9   :  { %4941 = vst [vmem:[#allocation40_spill] sm:$0xff] %v4241_v46  ;;  %4942 = vst [vmem:[#allocation41_spill] sm:$0xff] %v4244_v63  ;;  %924 = vmatmul.mubr.f32.gmra.mrb[32].mxu1 %v4946_v41  ;;  %v4264_v32 = vmul.f32 %v3877_v17, %v215_v44  ;;  %v223_v63 = vunpack.c.l.bf16 %v82_v18  ;;  %v227_v46 = vunpack.c.l.bf16 %v84_v35  ;;  %v236_v44 = vunpack.c.h.bf16 %v88_v37  ;;  %v92_v18 = vld [vmem:[%s4601_s1 + $0x238] sm:$0xff] }
  0xaa   :  { %4943 = vst [vmem:[#allocation45_spill] sm:$0xff] %v4247_v60  ;;  %4944 = vst [vmem:[#allocation44_spill] sm:$0xff] %v4256_v39  ;;  %1294 = vmatmul.mubr.f32.gmra.mrb[32].mxu0 %v4947_v59  ;;  %v228_v60 = vunpack.c.h.bf16 %v84_v35  ;;  %v4949_v39 = vld [vmem:[#allocation29_spill] sm:$0xff]  ;;  %v4272_v42 = vmul.f32 %v3922_v48, %v219_v50  ;;  %v4275_v41 = vmul.f32 %v3882_v24, %v224_v12  ;;  %v232_v59 = vunpack.c.h.bf16 %v86_v15  ;;  %v94_v12 = vld [vmem:[%s4601_s1 + $0x248] sm:$0xff] }
  0xab   :  { %4945 = vst [vmem:[#allocation42_spill] sm:$0xff] %v4259_v13  ;;  %4948 = vst [vmem:[#allocation43_spill] sm:$0xff] %v4264_v32  ;;  %929 = vmatprep.mubr.f32.mxu1 %v4949_v39  ;;  %1299 = vmatprep.mubr.f32.mxu0 %v4950_v62  ;;  %v4284_v32 = vmul.f32 %v3877_v17, %v223_v63  ;;  %v4287_v39 = vmul.f32 %v3922_v48, %v227_v46  ;;  %v231_v50 = vunpack.c.l.bf16 %v86_v15  ;;  %v96_v62 = vld [vmem:[%s4601_s1 + $0x258] sm:$0xff]  ;;  %v4958_v46 = vld [vmem:[#allocation22_spill] sm:$0xff] }
  0xac   :  { %4951 = vst [vmem:[#allocation10_spill] sm:$0xff] %v4272_v42  ;;  %4952 = vst [vmem:[#allocation9_spill] sm:$0xff] %v4275_v41  ;;  %v4281_v35 = vmul.f32 %v3899_v51, %v228_v60  ;;  %v4296_v41 = vmul.f32 %v3882_v24, %v232_v59  ;;  %v4299_v60 = vmul.f32 %v3899_v51, %v236_v44  ;;  %v235_v63 = vunpack.c.l.bf16 %v88_v37  ;;  %v98_v59 = vld [vmem:[%s4601_s1 + $0x268] sm:$0xff] }
  0xad   :  { %4954 = vst [vmem:[#allocation46_spill] sm:$0xff] %v4284_v32  ;;  %4955 = vst [vmem:[#allocation47_spill] sm:$0xff] %v4287_v39  ;;  %v240_v32 = vunpack.c.h.bf16 %v90_v52  ;;  %v4304_v15 = vmul.f32 %v3877_v17, %v231_v50  ;;  %v244_v39 = vunpack.c.h.bf16 %v92_v18  ;;  %v239_v42 = vunpack.c.l.bf16 %v90_v52  ;;  %v100_v52 = vld [vmem:[%s4601_s1 + $0x278] sm:$0xff] }
  0xae   :  { %4953 = vst [vmem:[#allocation49_spill] sm:$0xff] %v4281_v35  ;;  %4956 = vst [vmem:[#allocation48_spill] sm:$0xff] %v4296_v41  ;;  %v4957_v35 = vld [vmem:[#allocation23_spill] sm:$0xff]  ;;  %1300 = vmatmul.mubr.f32.gmra.mrb[34].mxu0 %v4958_v46  ;;  %v243_v13 = vunpack.c.l.bf16 %v92_v18  ;;  %v4312_v37 = vmul.f32 %v3922_v48, %v235_v63  ;;  %v252_v50 = vunpack.c.h.bf16 %v96_v62 }
  0xaf   :  { %930 = vmatmul.mubr.f32.gmra.mrb[34].mxu1 %v4957_v35  ;;  %v4959_v41 = vld [vmem:[#allocation27_spill] sm:$0xff]  ;;  %1305 = vmatprep.mubr.f32.mxu0 %v3835_v47  ;;  %v4315_v44 = vmul.f32 %v3882_v24, %v240_v32  ;;  %v248_v35 = vunpack.c.h.bf16 %v94_v12  ;;  %v4321_v18 = vmul.f32 %v3899_v51, %v244_v39  ;;  %v4324_v46 = vmul.f32 %v3877_v17, %v239_v42 }
  0xb0   :  { %935 = vmatprep.mubr.f32.mxu1 %v4959_v41  ;;  %4960 = vst [vmem:[#allocation50_spill] sm:$0xff] %v4312_v37  ;;  %v4327_v47 = vmul.f32 %v3922_v48, %v243_v13  ;;  %v247_v41 = vunpack.c.l.bf16 %v94_v12  ;;  %v4333_v32 = vmul.f32 %v3899_v51, %v252_v50  ;;  %v256_v37 = vunpack.c.h.bf16 %v98_v59 }
  0xb1   :  { %4961 = vst [vmem:[#allocation16_spill] sm:$0xff] %v4315_v44  ;;  %4962 = vst [vmem:[#allocation17_spill] sm:$0xff] %v4324_v46  ;;  %v4330_v63 = vmul.f32 %v3882_v24, %v248_v35  ;;  %v251_v44 = vunpack.c.l.bf16 %v96_v62  ;;  %v260_v42 = vunpack.c.h.bf16 %v100_v52  ;;  %v255_v46 = vunpack.c.l.bf16 %v98_v59 }
  0xb2   :  { %1306 = vmatmul.mubr.f32.gmra.mrb[36].mxu0 %v3849_v6  ;;  %v4338_v39 = vmul.f32 %v3877_v17, %v247_v41  ;;  %v259_v13 = vunpack.c.l.bf16 %v100_v52  ;;  %v4346_v62 = vmul.f32 %v3882_v24, %v256_v37  ;;  %v4967_v24 = vld [vmem:[#allocation4_spill] sm:$0xff] }
  0xb3   :  { %936 = vmatmul.mubr.f32.gmra.mrb[36].mxu1 %v3838_v58  ;;  %1311 = vmatprep.mubr.f32.mxu0 %v3862_v11  ;;  %v4343_v12 = vmul.f32 %v3922_v48, %v251_v44  ;;  %v4349_v58 = vmul.f32 %v3899_v51, %v260_v42  ;;  %v4352_v6 = vmul.f32 %v3877_v17, %v255_v46  ;;  %v4964_v11 = vld [vmem:[#allocation5_spill] sm:$0xff]  ;;  %v4966_v17 = vld [vmem:[#allocation30_spill] sm:$0xff]  ;;  %v4969_v51 = vld [vmem:[#allocation7_spill] sm:$0xff] }
  0xb4   :  { %941 = vmatprep.mubr.f32.mxu1 %v3852_v4  ;;  %v4355_v59 = vmul.f32 %v3922_v48, %v259_v13  ;;  %v4963_v4 = vld [vmem:[#allocation26_spill] sm:$0xff] }
  0xb5   :  { %v4972_v48 = vld [vmem:[#allocation6_spill] sm:$0xff] }
  0xb6   :  { %1312 = vmatmul.mubr.f32.gmra.mrb[38].mxu0 %v3894_v28  ;;  %v4968_v28 = vld [vmem:[#allocation3_spill] sm:$0xff] }
  0xb7   :  { %942 = vmatmul.mubr.f32.gmra.mrb[38].mxu1 %v3872_v7  ;;  %1549 = vmatprep.mubr.msk.f32.mxu0 %vm702_vm0, %v3927_v2  ;;  %v4965_v7 = vld [vmem:[#allocation32_spill] sm:$0xff]  ;;  %v4973_v2 = vld [vmem:[#allocation33_spill] sm:$0xff] }
  0xb8   :  { %1012 = vmatprep.mubr.f32.mxu1 %v3917_v22  ;;  %v4971_v22 = vld [vmem:[#allocation31_spill] sm:$0xff] }
  0xba   :  { %1383 = vmatmul.mubr.f32.vlgmr.msra.gmra.mrb[0].mxu0 %v3935_v45  ;;  %v4974_v45 = vld [vmem:[#allocation34_spill] sm:$0xff] }
  0xbb   :  { %1013 = vmatmul.mubr.f32.vlgmr.msra.gmra.mrb[0].mxu1 %v3914_v36  ;;  %1550 = vmatprep.mubr.msk.f32.mxu0 %vm702_vm0, %v3950_v23  ;;  %v4970_v36 = vld [vmem:[#allocation2_spill] sm:$0xff]  ;;  %v4976_v23 = vld [vmem:[#allocation8_spill] sm:$0xff] }
  0xbc   :  { %1018 = vmatprep.mubr.f32.mxu1 %v3938_v53  ;;  %v4975_v53 = vld [vmem:[#allocation35_spill] sm:$0xff] }
  0xbe   :  { %1389 = vmatmul.mubr.f32.gmra.mrb[2].mxu0 %v3956_v33  ;;  %v4978_v33 = vld [vmem:[#allocation36_spill] sm:$0xff] }
  0xbf   :  { %1019 = vmatmul.mubr.f32.gmra.mrb[2].mxu1 %v3953_v19  ;;  %1551 = vmatprep.mubr.msk.f32.mxu0 %vm702_vm0, %v3974_v43  ;;  %v4977_v19 = vld [vmem:[#allocation37_spill] sm:$0xff]  ;;  %v4980_v43 = vld [vmem:[#allocation39_spill] sm:$0xff] }
  0xc0   :  { %1024 = vmatprep.mubr.f32.mxu1 %v3971_v25  ;;  %v4979_v25 = vld [vmem:[#allocation38_spill] sm:$0xff] }
  0xc2   :  { %1395 = vmatmul.mubr.f32.gmra.mrb[4].mxu0 %v3987_v31  ;;  %v4982_v31 = vld [vmem:[#allocation41_spill] sm:$0xff] }
  0xc3   :  { %1025 = vmatmul.mubr.f32.gmra.mrb[4].mxu1 %v3979_v26  ;;  %1552 = vmatprep.mubr.msk.f32.mxu0 %vm702_vm0, %v4002_v20  ;;  %v4981_v26 = vld [vmem:[#allocation40_spill] sm:$0xff] }
  0xc4   :  { %1030 = vmatprep.mubr.f32.mxu1 %v3990_v3  ;;  %v4983_v3 = vld [vmem:[#allocation45_spill] sm:$0xff]  ;;  %v4984_v20 = vld [vmem:[#allocation44_spill] sm:$0xff] }
  0xc6   :  { %1401 = vmatmul.mubr.f32.gmra.mrb[6].mxu0 %v4964_v11 }
  0xc7   :  { %1031 = vmatmul.mubr.f32.gmra.mrb[6].mxu1 %v4963_v4  ;;  %1553 = vmatprep.mubr.msk.f32.mxu0 %vm702_vm0, %v4026_v30  ;;  %v4987_v30 = vld [vmem:[#allocation10_spill] sm:$0xff] }
  0xc8   :  { %1036 = vmatprep.mubr.f32.mxu1 %v4023_v57  ;;  %v4986_v57 = vld [vmem:[#allocation43_spill] sm:$0xff] }
  0xca   :  { %1407 = vmatmul.mubr.f32.gmra.mrb[8].mxu0 %v4039_v9  ;;  %v4988_v9 = vld [vmem:[#allocation9_spill] sm:$0xff] }
  0xcb   :  { %1037 = vmatmul.mubr.f32.gmra.mrb[8].mxu1 %v4031_v21  ;;  %1554 = vmatprep.mubr.msk.f32.mxu0 %vm702_vm0, %v4054_v49  ;;  %v4985_v21 = vld [vmem:[#allocation42_spill] sm:$0xff] }
  0xcc   :  { %1042 = vmatprep.mubr.f32.mxu1 %v4042_v0  ;;  %v4989_v0 = vld [vmem:[#allocation49_spill] sm:$0xff]  ;;  %v4990_v49 = vld [vmem:[#allocation46_spill] sm:$0xff] }
  0xce   :  { %1413 = vmatmul.mubr.f32.gmra.mrb[10].mxu0 %v4965_v7 }
  0xcf   :  { %1043 = vmatmul.mubr.f32.gmra.mrb[10].mxu1 %v4057_v61  ;;  %1555 = vmatprep.mubr.msk.f32.mxu0 %vm702_vm0, %v4078_v34  ;;  %v4991_v61 = vld [vmem:[#allocation47_spill] sm:$0xff]  ;;  %v4993_v34 = vld [vmem:[#allocation50_spill] sm:$0xff] }
  0xd0   :  { %1048 = vmatprep.mubr.f32.mxu1 %v4075_v56  ;;  %v4992_v56 = vld [vmem:[#allocation48_spill] sm:$0xff] }
  0xd2   :  { %1419 = vmatmul.mubr.f32.gmra.mrb[12].mxu0 %v4967_v24 }
  0xd3   :  { %1049 = vmatmul.mubr.f32.gmra.mrb[12].mxu1 %v4966_v17  ;;  %1556 = vmatprep.mubr.msk.f32.mxu0 %vm702_vm0, %v4969_v51 }
  0xd4   :  { %1054 = vmatprep.mubr.f32.mxu1 %v4968_v28 }
  0xd6   :  { %1425 = vmatmul.mubr.f32.gmra.mrb[14].mxu0 %v4971_v22 }
  0xd7   :  { %1055 = vmatmul.mubr.f32.gmra.mrb[14].mxu1 %v4970_v36  ;;  %1557 = vmatprep.mubr.msk.f32.mxu0 %vm702_vm0, %v4124_v1 }
  0xd8   :  { %1060 = vmatprep.mubr.f32.mxu1 %v4121_v8  ;;  %v4995_v8 = vld [vmem:[#allocation17_spill] sm:$0xff] }
  0xda   :  { %1431 = vmatmul.mubr.f32.gmra.mrb[16].mxu0 %v4137_v14 }
  0xdb   :  { %1061 = vmatmul.mubr.f32.gmra.mrb[16].mxu1 %v4129_v5  ;;  %1558 = vmatprep.mubr.msk.f32.mxu0 %vm702_vm0, %v4973_v2  ;;  %v4994_v5 = vld [vmem:[#allocation16_spill] sm:$0xff] }
  0xdc   :  { %1066 = vmatprep.mubr.f32.mxu1 %v4972_v48 }
  0xde   :  { %1437 = vmatmul.mubr.f32.gmra.mrb[18].mxu0 %v4975_v53 }
  0xdf   :  { %1067 = vmatmul.mubr.f32.gmra.mrb[18].mxu1 %v4974_v45  ;;  %1559 = vmatprep.mubr.msk.f32.mxu0 %vm702_vm0, %v4170_v27 }
  0xe0   :  { %1072 = vmatprep.mubr.f32.mxu1 %v4167_v54 }
  0xe2   :  { %1443 = vmatmul.mubr.f32.gmra.mrb[20].mxu0 %v4976_v23 }
  0xe3   :  { %1073 = vmatmul.mubr.f32.gmra.mrb[20].mxu1 %v4175_v16  ;;  %1560 = vmatprep.mubr.msk.f32.mxu0 %vm702_vm0, %v4978_v33 }
  0xe4   :  { %1078 = vmatprep.mubr.f32.mxu1 %v4977_v19 }
  0xe6   :  { %1449 = vmatmul.mubr.f32.gmra.mrb[22].mxu0 %v4980_v43 }
  0xe7   :  { %1079 = vmatmul.mubr.f32.gmra.mrb[22].mxu1 %v4979_v25  ;;  %1561 = vmatprep.mubr.msk.f32.mxu0 %vm702_vm0, %v4216_v38 }
  0xe8   :  { %1084 = vmatprep.mubr.f32.mxu1 %v4213_v29 }
  0xea   :  { %1455 = vmatmul.mubr.f32.gmra.mrb[24].mxu0 %v4229_v55 }
  0xeb   :  { %1085 = vmatmul.mubr.f32.gmra.mrb[24].mxu1 %v4221_v40  ;;  %1562 = vmatprep.mubr.msk.f32.mxu0 %vm702_vm0, %v4981_v26 }
  0xec   :  { %1090 = vmatprep.mubr.f32.mxu1 %v4232_v10 }
  0xee   :  { %1461 = vmatmul.mubr.f32.gmra.mrb[26].mxu0 %v4983_v3 }
  0xef   :  { %1091 = vmatmul.mubr.f32.gmra.mrb[26].mxu1 %v4982_v31  ;;  %1563 = vmatprep.mubr.msk.f32.mxu0 %vm702_vm0, %v4985_v21 }
  0xf0   :  { %1096 = vmatprep.mubr.f32.mxu1 %v4984_v20 }
  0xf2   :  { %1467 = vmatmul.mubr.f32.gmra.mrb[28].mxu0 %v4987_v30 }
  0xf3   :  { %1097 = vmatmul.mubr.f32.gmra.mrb[28].mxu1 %v4986_v57  ;;  %1564 = vmatprep.mubr.msk.f32.mxu0 %vm702_vm0, %v4989_v0 }
  0xf4   :  { %1102 = vmatprep.mubr.f32.mxu1 %v4988_v9 }
  0xf6   :  { %1473 = vmatmul.mubr.f32.gmra.mrb[30].mxu0 %v4991_v61 }
  0xf7   :  { %1103 = vmatmul.mubr.f32.gmra.mrb[30].mxu1 %v4990_v49  ;;  %1565 = vmatprep.mubr.msk.f32.mxu0 %vm702_vm0, %v4299_v60 }
  0xf8   :  { %1108 = vmatprep.mubr.f32.mxu1 %v4992_v56 }
  0xfa   :  { %1479 = vmatmul.mubr.f32.gmra.mrb[32].mxu0 %v4993_v34 }
  0xfb   :  { %1109 = vmatmul.mubr.f32.gmra.mrb[32].mxu1 %v4304_v15  ;;  %1566 = vmatprep.mubr.msk.f32.mxu0 %vm702_vm0, %v4321_v18 }
  0xfc   :  { %1114 = vmatprep.mubr.f32.mxu1 %v4994_v5 }
  0xfe   :  { %1485 = vmatmul.mubr.f32.gmra.mrb[34].mxu0 %v4327_v47 }
  0xff   :  { %1115 = vmatmul.mubr.f32.gmra.mrb[34].mxu1 %v4995_v8  ;;  %1567 = vmatprep.mubr.msk.f32.mxu0 %vm702_vm0, %v4333_v32 }
 0x100   :  { %1120 = vmatprep.mubr.f32.mxu1 %v4330_v63 }
 0x102   :  { %1491 = vmatmul.mubr.f32.gmra.mrb[36].mxu0 %v4343_v12 }
 0x103   :  { %1121 = vmatmul.mubr.f32.gmra.mrb[36].mxu1 %v4338_v39  ;;  %1568 = vmatprep.mubr.msk.f32.mxu0 %vm702_vm0, %v4349_v58 }
 0x104   :  { %1126 = vmatprep.mubr.f32.mxu1 %v4346_v62 }
 0x106   :  { %1497 = vmatmul.mubr.f32.gmra.mrb[38].mxu0 %v4355_v59 }
 0x107   :  { %1127 = vmatmul.mubr.f32.gmra.mrb[38].mxu1 %v4352_v6 }
 0x18d   :  { %v1384_v14 = vpop.f32.mrb[0].mxu0 }
 0x18e   :  { %v1014_v1 = vpop.f32.mrb[0].mxu1  ;;  %v1386_v27 = vpop.f32.mrb[1].mxu0 }
 0x18f   :  { %v1809_v16 = vadd.f32 %v1384_v14, %v1014_v1  ;;  %v1016_v54 = vpop.f32.mrb[1].mxu1 }
 0x190   :  { %v1810_v40 = vadd.f32 %v1386_v27, %v1016_v54 }
 0x191   :  { %1503 = vst [vmem:[%s4602_s3] sm:$0xff] %v1809_v16  ;;  %v1390_v38 = vpop.f32.mrb[2].mxu0 }
 0x192   :  { %1505 = vst.msk [vmem:[%s4602_s3 + $0x8] sm:$0xff] %vm1504_vm1, %v1810_v40  ;;  %v1020_v29 = vpop.f32.mrb[2].mxu1  ;;  %v1392_v60 = vpop.f32.mrb[3].mxu0 }
 0x193   :  { %v1811_v55 = vadd.f32 %v1390_v38, %v1020_v29  ;;  %v1022_v10 = vpop.f32.mrb[3].mxu1 }
 0x194   :  { %v1812_v15 = vadd.f32 %v1392_v60, %v1022_v10 }
 0x195   :  { %1506 = vst [vmem:[%s4602_s3 + $0x10] sm:$0xff] %v1811_v55  ;;  %v1396_v44 = vpop.f32.mrb[4].mxu0 }
 0x196   :  { %1507 = vst.msk [vmem:[%s4602_s3 + $0x18] sm:$0xff] %vm1504_vm1, %v1812_v15  ;;  %v1026_v37 = vpop.f32.mrb[4].mxu1  ;;  %v1398_v52 = vpop.f32.mrb[5].mxu0 }
 0x197   :  { %v1813_v35 = vadd.f32 %v1396_v44, %v1026_v37  ;;  %v1028_v50 = vpop.f32.mrb[5].mxu1 }
 0x198   :  { %v1814_v18 = vadd.f32 %v1398_v52, %v1028_v50 }
 0x199   :  { %1508 = vst [vmem:[%s4602_s3 + $0x20] sm:$0xff] %v1813_v35  ;;  %v1402_v47 = vpop.f32.mrb[6].mxu0 }
 0x19a   :  { %1509 = vst.msk [vmem:[%s4602_s3 + $0x28] sm:$0xff] %vm1504_vm1, %v1814_v18  ;;  %v1032_v46 = vpop.f32.mrb[6].mxu1  ;;  %v1404_v32 = vpop.f32.mrb[7].mxu0 }
 0x19b   :  { %v1815_v41 = vadd.f32 %v1402_v47, %v1032_v46  ;;  %v1034_v63 = vpop.f32.mrb[7].mxu1 }
 0x19c   :  { %v1816_v39 = vadd.f32 %v1404_v32, %v1034_v63 }
 0x19d   :  { %1510 = vst [vmem:[%s4602_s3 + $0x30] sm:$0xff] %v1815_v41  ;;  %v1408_v13 = vpop.f32.mrb[8].mxu0 }
 0x19e   :  { %1511 = vst.msk [vmem:[%s4602_s3 + $0x38] sm:$0xff] %vm1504_vm1, %v1816_v39  ;;  %v1038_v42 = vpop.f32.mrb[8].mxu1  ;;  %v1410_v58 = vpop.f32.mrb[9].mxu0 }
 0x19f   :  { %v1817_v12 = vadd.f32 %v1408_v13, %v1038_v42  ;;  %v1040_v62 = vpop.f32.mrb[9].mxu1 }
 0x1a0   :  { %v1818_v6 = vadd.f32 %v1410_v58, %v1040_v62 }
 0x1a1   :  { %1512 = vst [vmem:[%s4602_s3 + $0x40] sm:$0xff] %v1817_v12  ;;  %v1414_v4 = vpop.f32.mrb[10].mxu0 }
 0x1a2   :  { %1513 = vst.msk [vmem:[%s4602_s3 + $0x48] sm:$0xff] %vm1504_vm1, %v1818_v6  ;;  %v1044_v59 = vpop.f32.mrb[10].mxu1  ;;  %v1416_v17 = vpop.f32.mrb[11].mxu0 }
 0x1a3   :  { %v1819_v11 = vadd.f32 %v1414_v4, %v1044_v59  ;;  %v1046_v7 = vpop.f32.mrb[11].mxu1 }
 0x1a4   :  { %v1820_v24 = vadd.f32 %v1416_v17, %v1046_v7 }
 0x1a5   :  { %1514 = vst [vmem:[%s4602_s3 + $0x50] sm:$0xff] %v1819_v11  ;;  %v1420_v51 = vpop.f32.mrb[12].mxu0 }
 0x1a6   :  { %1515 = vst.msk [vmem:[%s4602_s3 + $0x58] sm:$0xff] %vm1504_vm1, %v1820_v24  ;;  %v1050_v28 = vpop.f32.mrb[12].mxu1  ;;  %v1422_v48 = vpop.f32.mrb[13].mxu0 }
 0x1a7   :  { %v1821_v36 = vadd.f32 %v1420_v51, %v1050_v28  ;;  %v1052_v22 = vpop.f32.mrb[13].mxu1 }
 0x1a8   :  { %v1822_v2 = vadd.f32 %v1422_v48, %v1052_v22 }
 0x1a9   :  { %1516 = vst [vmem:[%s4602_s3 + $0x60] sm:$0xff] %v1821_v36  ;;  %v1426_v53 = vpop.f32.mrb[14].mxu0 }
 0x1aa   :  { %1517 = vst.msk [vmem:[%s4602_s3 + $0x68] sm:$0xff] %vm1504_vm1, %v1822_v2  ;;  %v1056_v45 = vpop.f32.mrb[14].mxu1  ;;  %v1428_v33 = vpop.f32.mrb[15].mxu0 }
 0x1ab   :  { %v1823_v23 = vadd.f32 %v1426_v53, %v1056_v45  ;;  %v1058_v19 = vpop.f32.mrb[15].mxu1 }
 0x1ac   :  { %v1824_v25 = vadd.f32 %v1428_v33, %v1058_v19 }
 0x1ad   :  { %1518 = vst [vmem:[%s4602_s3 + $0x70] sm:$0xff] %v1823_v23  ;;  %v1432_v26 = vpop.f32.mrb[16].mxu0 }
 0x1ae   :  { %1519 = vst.msk [vmem:[%s4602_s3 + $0x78] sm:$0xff] %vm1504_vm1, %v1824_v25  ;;  %v1062_v43 = vpop.f32.mrb[16].mxu1  ;;  %v1434_v20 = vpop.f32.mrb[17].mxu0 }
 0x1af   :  { %v1825_v31 = vadd.f32 %v1432_v26, %v1062_v43  ;;  %v1064_v3 = vpop.f32.mrb[17].mxu1 }
 0x1b0   :  { %v1826_v21 = vadd.f32 %v1434_v20, %v1064_v3 }
 0x1b1   :  { %1520 = vst [vmem:[%s4602_s3 + $0x80] sm:$0xff] %v1825_v31  ;;  %v1438_v30 = vpop.f32.mrb[18].mxu0 }
 0x1b2   :  { %1521 = vst.msk [vmem:[%s4602_s3 + $0x88] sm:$0xff] %vm1504_vm1, %v1826_v21  ;;  %v1068_v57 = vpop.f32.mrb[18].mxu1  ;;  %v1440_v49 = vpop.f32.mrb[19].mxu0 }
 0x1b3   :  { %v1827_v9 = vadd.f32 %v1438_v30, %v1068_v57  ;;  %v1070_v0 = vpop.f32.mrb[19].mxu1 }
 0x1b4   :  { %v1828_v61 = vadd.f32 %v1440_v49, %v1070_v0 }
 0x1b5   :  { %1522 = vst [vmem:[%s4602_s3 + $0x90] sm:$0xff] %v1827_v9  ;;  %v1444_v34 = vpop.f32.mrb[20].mxu0 }
 0x1b6   :  { %1523 = vst.msk [vmem:[%s4602_s3 + $0x98] sm:$0xff] %vm1504_vm1, %v1828_v61  ;;  %v1074_v56 = vpop.f32.mrb[20].mxu1  ;;  %v1446_v1 = vpop.f32.mrb[21].mxu0 }
 0x1b7   :  { %v1829_v5 = vadd.f32 %v1444_v34, %v1074_v56  ;;  %v1076_v8 = vpop.f32.mrb[21].mxu1 }
 0x1b8   :  { %v1830_v14 = vadd.f32 %v1446_v1, %v1076_v8 }
 0x1b9   :  { %1524 = vst [vmem:[%s4602_s3 + $0xa0] sm:$0xff] %v1829_v5  ;;  %v1450_v54 = vpop.f32.mrb[22].mxu0 }
 0x1ba   :  { %1525 = vst.msk [vmem:[%s4602_s3 + $0xa8] sm:$0xff] %vm1504_vm1, %v1830_v14  ;;  %v1080_v16 = vpop.f32.mrb[22].mxu1  ;;  %v1452_v29 = vpop.f32.mrb[23].mxu0 }
 0x1bb   :  { %v1831_v27 = vadd.f32 %v1450_v54, %v1080_v16  ;;  %v1082_v40 = vpop.f32.mrb[23].mxu1 }
 0x1bc   :  { %v1832_v38 = vadd.f32 %v1452_v29, %v1082_v40 }
 0x1bd   :  { %1526 = vst [vmem:[%s4602_s3 + $0xb0] sm:$0xff] %v1831_v27  ;;  %v1456_v10 = vpop.f32.mrb[24].mxu0 }
 0x1be   :  { %1527 = vst.msk [vmem:[%s4602_s3 + $0xb8] sm:$0xff] %vm1504_vm1, %v1832_v38  ;;  %v1086_v55 = vpop.f32.mrb[24].mxu1  ;;  %v1458_v37 = vpop.f32.mrb[25].mxu0 }
 0x1bf   :  { %v1833_v60 = vadd.f32 %v1456_v10, %v1086_v55  ;;  %v1088_v15 = vpop.f32.mrb[25].mxu1 }
 0x1c0   :  { %v1834_v44 = vadd.f32 %v1458_v37, %v1088_v15 }
 0x1c1   :  { %1528 = vst [vmem:[%s4602_s3 + $0xc0] sm:$0xff] %v1833_v60  ;;  %v1462_v50 = vpop.f32.mrb[26].mxu0 }
 0x1c2   :  { %1529 = vst.msk [vmem:[%s4602_s3 + $0xc8] sm:$0xff] %vm1504_vm1, %v1834_v44  ;;  %v1092_v35 = vpop.f32.mrb[26].mxu1  ;;  %v1464_v46 = vpop.f32.mrb[27].mxu0 }
 0x1c3   :  { %v1835_v52 = vadd.f32 %v1462_v50, %v1092_v35  ;;  %v1094_v18 = vpop.f32.mrb[27].mxu1 }
 0x1c4   :  { %v1836_v47 = vadd.f32 %v1464_v46, %v1094_v18 }
 0x1c5   :  { %1530 = vst [vmem:[%s4602_s3 + $0xd0] sm:$0xff] %v1835_v52  ;;  %v1468_v63 = vpop.f32.mrb[28].mxu0 }
 0x1c6   :  { %1531 = vst.msk [vmem:[%s4602_s3 + $0xd8] sm:$0xff] %vm1504_vm1, %v1836_v47  ;;  %v1098_v41 = vpop.f32.mrb[28].mxu1  ;;  %v1470_v42 = vpop.f32.mrb[29].mxu0 }
 0x1c7   :  { %v1837_v32 = vadd.f32 %v1468_v63, %v1098_v41  ;;  %v1100_v39 = vpop.f32.mrb[29].mxu1 }
 0x1c8   :  { %v1838_v13 = vadd.f32 %v1470_v42, %v1100_v39 }
 0x1c9   :  { %1532 = vst [vmem:[%s4602_s3 + $0xe0] sm:$0xff] %v1837_v32  ;;  %v1474_v62 = vpop.f32.mrb[30].mxu0 }
 0x1ca   :  { %1533 = vst.msk [vmem:[%s4602_s3 + $0xe8] sm:$0xff] %vm1504_vm1, %v1838_v13  ;;  %v1104_v12 = vpop.f32.mrb[30].mxu1  ;;  %v1476_v59 = vpop.f32.mrb[31].mxu0 }
 0x1cb   :  { %v1839_v58 = vadd.f32 %v1474_v62, %v1104_v12  ;;  %v1106_v6 = vpop.f32.mrb[31].mxu1 }
 0x1cc   :  { %v1840_v4 = vadd.f32 %v1476_v59, %v1106_v6 }
 0x1cd   :  { %1534 = vst [vmem:[%s4602_s3 + $0xf0] sm:$0xff] %v1839_v58  ;;  %v1480_v7 = vpop.f32.mrb[32].mxu0 }
 0x1ce   :  { %1535 = vst.msk [vmem:[%s4602_s3 + $0xf8] sm:$0xff] %vm1504_vm1, %v1840_v4  ;;  %v1110_v11 = vpop.f32.mrb[32].mxu1  ;;  %v1482_v28 = vpop.f32.mrb[33].mxu0 }
 0x1cf   :  { %v1841_v17 = vadd.f32 %v1480_v7, %v1110_v11  ;;  %v1112_v24 = vpop.f32.mrb[33].mxu1 }
 0x1d0   :  { %v1842_v51 = vadd.f32 %v1482_v28, %v1112_v24 }
 0x1d1   :  { %1536 = vst [vmem:[%s4602_s3 + $0x100] sm:$0xff] %v1841_v17  ;;  %v1486_v22 = vpop.f32.mrb[34].mxu0 }
 0x1d2   :  { %1537 = vst.msk [vmem:[%s4602_s3 + $0x108] sm:$0xff] %vm1504_vm1, %v1842_v51  ;;  %v1116_v36 = vpop.f32.mrb[34].mxu1  ;;  %v1488_v45 = vpop.f32.mrb[35].mxu0 }
 0x1d3   :  { %v1843_v48 = vadd.f32 %v1486_v22, %v1116_v36  ;;  %v1118_v2 = vpop.f32.mrb[35].mxu1 }
 0x1d4   :  { %v1844_v53 = vadd.f32 %v1488_v45, %v1118_v2 }
 0x1d5   :  { %1538 = vst [vmem:[%s4602_s3 + $0x110] sm:$0xff] %v1843_v48  ;;  %v1492_v19 = vpop.f32.mrb[36].mxu0 }
 0x1d6   :  { %1539 = vst.msk [vmem:[%s4602_s3 + $0x118] sm:$0xff] %vm1504_vm1, %v1844_v53  ;;  %v1122_v23 = vpop.f32.mrb[36].mxu1  ;;  %v1494_v43 = vpop.f32.mrb[37].mxu0 }
 0x1d7   :  { %v1845_v33 = vadd.f32 %v1492_v19, %v1122_v23  ;;  %v1124_v25 = vpop.f32.mrb[37].mxu1 }
 0x1d8   :  { %v1846_v26 = vadd.f32 %v1494_v43, %v1124_v25 }
 0x1d9   :  { %1540 = vst [vmem:[%s4602_s3 + $0x120] sm:$0xff] %v1845_v33  ;;  %v1498_v3 = vpop.f32.mrb[38].mxu0 }
 0x1da   :  { %1541 = vst.msk [vmem:[%s4602_s3 + $0x128] sm:$0xff] %vm1504_vm1, %v1846_v26  ;;  %v1128_v31 = vpop.f32.mrb[38].mxu1  ;;  %v1500_v57 = vpop.f32.mrb[39].mxu0 }
 0x1db   :  { %v1847_v20 = vadd.f32 %v1498_v3, %v1128_v31  ;;  %v1130_v21 = vpop.f32.mrb[39].mxu1 }
 0x1dc   :  { %v1848_v30 = vadd.f32 %v1500_v57, %v1130_v21 }
 0x1dd   :  { %1542 = vst [vmem:[%s4602_s3 + $0x130] sm:$0xff] %v1847_v20 }
 0x1de   :  { %1543 = vst.msk [vmem:[%s4602_s3 + $0x138] sm:$0xff] %vm1504_vm1, %v1848_v30 }

</bundles_post_ra>
